<compile_context>
chip_gen: v7x
topology: tpu7x:2x2x1
jax: 0.10.0
libtpu: 0.0.40
codegen_flags: <defaults>
</compile_context>

<pallas_src>
import functools

import jax
import jax.numpy as jnp
from jax.experimental import pallas as pl
from jax.experimental.pallas import tpu as pltpu

LN_EPS = 1e-5
BN_EPS = 1e-5
_NEG = -1e30


def _round_up(v, m):
    return ((v + m - 1) // m) * m


_CPARAMS = pltpu.CompilerParams(
    dimension_semantics=("parallel",),
    vmem_limit_bytes=64 * 1024 * 1024,
)


# ---------------------------------------------------------------------------
# Pallas kernels
# ---------------------------------------------------------------------------
def _proj_kernel(x_ref, w_ref, b_ref, out_ref):
    # Fused projection: [Wh | Wg | Wl] concatenated (zero-padded to a multiple of
    # 128 lanes) -> one lane-dense MXU pass instead of three 32-wide ones.
    out_ref[...] = (
        jnp.dot(x_ref[...], w_ref[...], preferred_element_type=jnp.float32)
        + b_ref[...]
    )


def _agg_norm_kernel(beta, d,
                     a_ref, slab_full_ref, slab_row_ref,
                     bn_scale_ref, bn_shift_ref, ln_g_ref, ln_b_ref,
                     xloc_ref,
                     x_out_ref, xloc_out_ref):
    # slab columns: [0:d) = x@Wh + bh, [d:2d) = x@Wg, [2d:3d) = x@Wl  (pad beyond 3d)
    rows = slab_row_ref[...]
    h = jnp.maximum(rows[:, 0:d], 0.0)            # h = relu(x @ Wh + bh)
    lin = rows[:, 2 * d:3 * d]                    # residual Linear (bias folded into BN shift)
    xw_full = slab_full_ref[...][:, d:2 * d]      # (x @ Wg) for ALL source nodes

    # GCN aggregation: A_norm streamed as bf16, f32 accumulation on the MXU.
    a = a_ref[...].astype(jnp.float32)
    gcn = jnp.dot(a, xw_full, preferred_element_type=jnp.float32)

    # BatchNorm1d (eval) with pre-folded scale/shift; (bg + bl) folded into shift.
    z = (gcn + lin) * bn_scale_ref[...] + bn_shift_ref[...]
    z = jnp.maximum(z, 0.0)

    # LayerNorm(h * z) over the feature axis; (1 - beta) pre-folded into gamma/beta.
    hz = h * z
    mu = jnp.mean(hz, axis=-1, keepdims=True)
    dlt = hz - mu
    var = jnp.mean(dlt * dlt, axis=-1, keepdims=True)
    ln = dlt * jax.lax.rsqrt(var + LN_EPS) * ln_g_ref[...] + ln_b_ref[...]

    x_new = ln + beta * z
    x_out_ref[...] = x_new
    xloc_out_ref[...] = xloc_ref[...] + x_new     # x_local accumulated in place (aliased)


def _pred_kernel(xloc_ref, wp_ref, bp_ref, out_ref):
    # Lane-dense (padded-to-128) logits; padded classes carry a -1e30 bias so
    # they contribute nothing to the softmax normalizer.
    z = jnp.dot(xloc_ref[...], wp_ref[...],
                preferred_element_type=jnp.float32) + bp_ref[...]
    m = jnp.max(z, axis=-1, keepdims=True)
    e = jnp.exp(z - m)
    lse = jnp.log(jnp.sum(e, axis=-1, keepdims=True)) + m
    out_ref[...] = z - lse


# ---------------------------------------------------------------------------
# Wrappers
# ---------------------------------------------------------------------------
def _fold_layer_params(p, beta):
    """Concatenate/pad the x-side weights and pre-fold all affine constants."""
    d = p["wh"].shape[1]
    ppad = _round_up(3 * d, 128)
    w = jnp.concatenate([p["wh"], p["wg"], p["wl"]], axis=1)
    w = jnp.pad(w, ((0, 0), (0, ppad - 3 * d)))
    b = jnp.concatenate(
        [p["bh"], jnp.zeros_like(p["bg"]), jnp.zeros_like(p["bl"])], axis=1)
    b = jnp.pad(b, ((0, 0), (0, ppad - 3 * d)))
    bn_scale = p["bn_g"] * jax.lax.rsqrt(p["bn_v"] + BN_EPS)
    bn_shift = p["bn_b"] - p["bn_m"] * bn_scale + (p["bg"] + p["bl"]) * bn_scale
    return dict(
        w_fused=w, b_fused=b,
        bn_scale=bn_scale, bn_shift=bn_shift,
        ln_g=(1.0 - beta) * p["ln_g"], ln_b=(1.0 - beta) * p["ln_b"],
    )


def polynormer_layer(x, a_bf16, fold, x_local, beta, block_rows):
    n, cin = x.shape
    d = fold["bn_scale"].shape[1]
    ppad = fold["w_fused"].shape[1]
    grid = (n // block_rows,)

    # Pass 1: fused projection slab (N, ppad) = x @ [Wh|Wg|Wl] + bias.
    slab = pl.pallas_call(
        _proj_kernel,
        out_shape=jax.ShapeDtypeStruct((n, ppad), jnp.float32),
        grid=grid,
        in_specs=[
            pl.BlockSpec((block_rows, cin), lambda i: (i, 0)),
            pl.BlockSpec((cin, ppad), lambda i: (0, 0)),
            pl.BlockSpec((1, ppad), lambda i: (0, 0)),
        ],
        out_specs=pl.BlockSpec((block_rows, ppad), lambda i: (i, 0)),
        compiler_params=_CPARAMS,
    )(x, fold["w_fused"], fold["b_fused"])

    # Pass 2: GCN aggregation + residual + BN + relu + LN + beta-mix + x_local.
    kernel = functools.partial(_agg_norm_kernel, beta, d)
    x_new, x_local_new = pl.pallas_call(
        kernel,
        out_shape=(jax.ShapeDtypeStruct((n, d), jnp.float32),
                   jax.ShapeDtypeStruct((n, d), jnp.float32)),
        grid=grid,
        in_specs=[
            pl.BlockSpec((block_rows, n), lambda i: (i, 0)),    # A_norm row tile (bf16)
            pl.BlockSpec((n, ppad), lambda i: (0, 0)),          # slab, full (source nodes)
            pl.BlockSpec((block_rows, ppad), lambda i: (i, 0)),  # slab, this row tile
            pl.BlockSpec((1, d), lambda i: (0, 0)),             # bn_scale
            pl.BlockSpec((1, d), lambda i: (0, 0)),             # bn_shift (+bg+bl folded)
            pl.BlockSpec((1, d), lambda i: (0, 0)),             # (1-beta)*ln_gamma
            pl.BlockSpec((1, d), lambda i: (0, 0)),             # (1-beta)*ln_beta
            pl.BlockSpec((block_rows, d), lambda i: (i, 0)),    # x_local (aliased)
        ],
        out_specs=(pl.BlockSpec((block_rows, d), lambda i: (i, 0)),
                   pl.BlockSpec((block_rows, d), lambda i: (i, 0))),
        input_output_aliases={7: 1},                            # x_local updated in place
        compiler_params=_CPARAMS,
    )(a_bf16, slab, slab, fold["bn_scale"], fold["bn_shift"],
      fold["ln_g"], fold["ln_b"], x_local)
    return x_new, x_local_new


def polynormer_predict(x_local, wp_pad, bp_pad, block_rows):
    n, d = x_local.shape
    cpad = wp_pad.shape[1]
    grid = (n // block_rows,)
    return pl.pallas_call(
        _pred_kernel,
        out_shape=jax.ShapeDtypeStruct((n, cpad), jnp.float32),
        grid=grid,
        in_specs=[
            pl.BlockSpec((block_rows, d), lambda i: (i, 0)),
            pl.BlockSpec((d, cpad), lambda i: (0, 0)),
            pl.BlockSpec((1, cpad), lambda i: (0, 0)),
        ],
        out_specs=pl.BlockSpec((block_rows, cpad), lambda i: (i, 0)),
        compiler_params=_CPARAMS,
    )(x_local, wp_pad, bp_pad)


def polynormer_forward(x, a_bf16, layer_params, wp, bp, beta, block_rows=32):
    n = x.shape[0]
    assert n % block_rows == 0, "demo wrapper requires N % block_rows == 0"
    d = layer_params[0]["wh"].shape[1]
    out_c = wp.shape[1]
    cpad = _round_up(out_c, 128)
    wp_pad = jnp.pad(wp, ((0, 0), (0, cpad - out_c)))
    bp_pad = jnp.pad(bp, ((0, 0), (0, cpad - out_c)), constant_values=_NEG)

    x_local = jnp.zeros((n, d), jnp.float32)
    for p in layer_params:
        fold = _fold_layer_params(p, beta)
        x, x_local = polynormer_layer(x, a_bf16, fold, x_local, beta, block_rows)
    out_pad = polynormer_predict(x_local, wp_pad, bp_pad, block_rows)
    return out_pad[:, :out_c]


# ---------------------------------------------------------------------------
# Pure-JAX reference (for a correctness sanity check)
# ---------------------------------------------------------------------------
def _reference(x, a_norm, layer_params, wp, bp, beta):
    hi = jax.lax.Precision.HIGHEST
    x_local = 0.0
    for p in layer_params:
        h = jax.nn.relu(jnp.dot(x, p["wh"], precision=hi) + p["bh"])
        z = (jnp.dot(a_norm, jnp.dot(x, p["wg"], precision=hi), precision=hi) + p["bg"]
             + jnp.dot(x, p["wl"], precision=hi) + p["bl"])
        z = (z - p["bn_m"]) / jnp.sqrt(p["bn_v"] + BN_EPS) * p["bn_g"] + p["bn_b"]
        z = jax.nn.relu(z)
        hz = h * z
        mu = jnp.mean(hz, axis=-1, keepdims=True)
        var = jnp.mean((hz - mu) ** 2, axis=-1, keepdims=True)
        ln = (hz - mu) / jnp.sqrt(var + LN_EPS) * p["ln_g"] + p["ln_b"]
        x = (1.0 - beta) * ln + beta * z
        x_local = x_local + x
    z = jnp.dot(x_local, wp, precision=hi) + bp
    return jax.nn.log_softmax(z, axis=-1)


# ---------------------------------------------------------------------------
# Parameter / graph construction (deterministic, in-script)
# ---------------------------------------------------------------------------
def _init_layer_params(key, cin, d):
    ks = jax.random.split(key, 4)

    def w(k, fan_in):
        return jax.random.normal(k, (fan_in, d), jnp.float32) / jnp.sqrt(fan_in)

    return dict(
        wh=w(ks[0], cin), bh=0.01 * jax.random.normal(ks[3], (1, d), jnp.float32),
        wg=w(ks[1], cin), bg=jnp.zeros((1, d), jnp.float32),
        wl=w(ks[2], cin), bl=jnp.zeros((1, d), jnp.float32),
        bn_g=jnp.ones((1, d), jnp.float32), bn_b=jnp.zeros((1, d), jnp.float32),
        bn_m=jnp.zeros((1, d), jnp.float32), bn_v=jnp.ones((1, d), jnp.float32),
        ln_g=jnp.ones((1, d), jnp.float32), ln_b=jnp.zeros((1, d), jnp.float32),
    )


def _build_norm_adj(src, dst, n):
    # dense A[target, source]; gcn_norm: remove self loops, add self loops, sym-normalize
    a = jnp.zeros((n, n), jnp.float32).at[dst, src].add(1.0)
    a = a * (1.0 - jnp.eye(n, dtype=jnp.float32)) + jnp.eye(n, dtype=jnp.float32)
    deg = jnp.sum(a, axis=1)
    dinv = 1.0 / jnp.sqrt(deg)
    return dinv[:, None] * a * dinv[None, :]


if __name__ == "__main__":
    N, IN_C, HID, HEADS, OUT_C, LAYERS = 64, 16, 32, 1, 8, 7
    BETA = 0.9
    BLOCK_ROWS = 32
    INNER = HEADS * HID

    key = jax.random.PRNGKey(0)
    k_x, k_e1, k_e2, k_p = jax.random.split(key, 4)

    x = jax.random.normal(k_x, (N, IN_C), jnp.float32)
    E = 256
    src = jax.random.randint(k_e1, (E,), 0, N)
    dst = jax.random.randint(k_e2, (E,), 0, N)
    a_norm = _build_norm_adj(src, dst, N)
    # A_norm is re-streamed every layer: keep it in bf16 (halves HBM/VMEM traffic).
    a_bf16 = a_norm.astype(jnp.bfloat16)

    lkeys = jax.random.split(k_p, LAYERS + 1)
    layer_params = [
        _init_layer_params(lkeys[i], IN_C if i == 0 else INNER, INNER)
        for i in range(LAYERS)
    ]
    wp = jax.random.normal(lkeys[LAYERS], (INNER, OUT_C), jnp.float32) / jnp.sqrt(INNER)
    bp = jnp.zeros((1, OUT_C), jnp.float32)

    fwd = jax.jit(functools.partial(polynormer_forward, beta=BETA,
                                    block_rows=BLOCK_ROWS))
    out = fwd(x, a_bf16, layer_params, wp, bp)
    out = jax.block_until_ready(out)

    # Reference uses the same (bf16-quantized) adjacency values in f32/HIGHEST math.
    ref = _reference(x, a_bf16.astype(jnp.float32), layer_params, wp, bp, BETA)
    assert out.shape == (N, OUT_C)
    assert bool(jnp.all(jnp.isfinite(out)))
    err = float(jnp.max(jnp.abs(out - ref)))
    assert err < 1e-2, f"mismatch vs reference: {err}"

    print("KERNEL_OK")
</pallas_src>

<mosaic_0001>
module attributes {stable_mosaic.version = 11 : i64} {
  func.func @_proj_kernel(%arg0: i32, %arg1: memref<32x16xf32, #tpu.memory_space<vmem>>, %arg2: memref<16x128xf32, #tpu.memory_space<vmem>>, %arg3: memref<1x128xf32, #tpu.memory_space<vmem>>, %arg4: memref<32x128xf32, #tpu.memory_space<vmem>>) attributes {dimension_semantics = [#tpu.dimension_semantics<parallel>], iteration_bounds = array<i64: 2>, scalar_prefetch = 0 : i64, scratch_operands = 0 : i64, tpu.core_type = #tpu.core_type<tc>, window_params = [{transform_indices = @transform_0, window_bounds = array<i64: 32, 16>}, {pipeline_mode = #tpu.pipeline_mode<synchronous>, transform_indices = @transform_1, window_bounds = array<i64: 16, 128>}, {pipeline_mode = #tpu.pipeline_mode<synchronous>, transform_indices = @transform_2, window_bounds = array<i64: 1, 128>}, {transform_indices = @transform_3, window_bounds = array<i64: 32, 128>}]} {
    %c0 = arith.constant 0 : index
    %c0_0 = arith.constant 0 : index
    %0 = vector.load %arg1[%c0, %c0_0] : memref<32x16xf32, #tpu.memory_space<vmem>>, vector<32x16xf32>
    %c0_1 = arith.constant 0 : index
    %c0_2 = arith.constant 0 : index
    %1 = vector.load %arg2[%c0_1, %c0_2] : memref<16x128xf32, #tpu.memory_space<vmem>>, vector<16x128xf32>
    %cst = arith.constant dense<0.000000e+00> : vector<32x128xf32>
    %2 = tpu.matmul %0, %1, %cst {dimension_numbers = #tpu.dot_dimension_numbers<[1], [0], [0], [1], [0, 0, 1, 1], [], []>} : vector<32x16xf32>, vector<16x128xf32>, vector<32x128xf32> -> vector<32x128xf32>
    %c0_3 = arith.constant 0 : index
    %c0_4 = arith.constant 0 : index
    %3 = vector.load %arg3[%c0_3, %c0_4] : memref<1x128xf32, #tpu.memory_space<vmem>>, vector<1x128xf32>
    %4 = vector.broadcast %3 : vector<1x128xf32> to vector<32x128xf32>
    %5 = arith.addf %2, %4 : vector<32x128xf32>
    %c0_5 = arith.constant 0 : index
    %c0_6 = arith.constant 0 : index
    %6 = vector.load %arg4[%c0_5, %c0_6] : memref<32x128xf32, #tpu.memory_space<vmem>>, vector<32x128xf32>
    tpu.vector_store %arg4[%c0_5, %c0_6], %5 {strides = array<i32>} : memref<32x128xf32, #tpu.memory_space<vmem>>, vector<32x128xf32>,
    return
  }
  func.func @transform_0(%arg0: i32) -> (i32, i32) {
    %c0_i32 = arith.constant 0 : i32
    %c0_i32_0 = arith.constant 0 : i32
    return %arg0, %c0_i32 : i32, i32
  }
  func.func @transform_1(%arg0: i32) -> (i32, i32) {
    %c0_i32 = arith.constant 0 : i32
    %c0_i32_0 = arith.constant 0 : i32
    %c0_i32_1 = arith.constant 0 : i32
    return %c0_i32, %c0_i32_0 : i32, i32
  }
  func.func @transform_2(%arg0: i32) -> (i32, i32) {
    %c0_i32 = arith.constant 0 : i32
    %c0_i32_0 = arith.constant 0 : i32
    %c0_i32_1 = arith.constant 0 : i32
    return %c0_i32, %c0_i32_0 : i32, i32
  }
  func.func @transform_3(%arg0: i32) -> (i32, i32) {
    %c0_i32 = arith.constant 0 : i32
    %c0_i32_0 = arith.constant 0 : i32
    return %arg0, %c0_i32 : i32, i32
  }
}

module attributes {stable_mosaic.version = 11 : i64} {
  func.func @_proj_kernel(%arg0: i32, %arg1: memref<32x32xf32, #tpu.memory_space<vmem>>, %arg2: memref<32x128xf32, #tpu.memory_space<vmem>>, %arg3: memref<1x128xf32, #tpu.memory_space<vmem>>, %arg4: memref<32x128xf32, #tpu.memory_space<vmem>>) attributes {dimension_semantics = [#tpu.dimension_semantics<parallel>], iteration_bounds = array<i64: 2>, scalar_prefetch = 0 : i64, scratch_operands = 0 : i64, tpu.core_type = #tpu.core_type<tc>, window_params = [{transform_indices = @transform_0, window_bounds = array<i64: 32, 32>}, {pipeline_mode = #tpu.pipeline_mode<synchronous>, transform_indices = @transform_1, window_bounds = array<i64: 32, 128>}, {pipeline_mode = #tpu.pipeline_mode<synchronous>, transform_indices = @transform_2, window_bounds = array<i64: 1, 128>}, {transform_indices = @transform_3, window_bounds = array<i64: 32, 128>}]} {
    %c0 = arith.constant 0 : index
    %c0_0 = arith.constant 0 : index
    %0 = vector.load %arg1[%c0, %c0_0] : memref<32x32xf32, #tpu.memory_space<vmem>>, vector<32x32xf32>
    %c0_1 = arith.constant 0 : index
    %c0_2 = arith.constant 0 : index
    %1 = vector.load %arg2[%c0_1, %c0_2] : memref<32x128xf32, #tpu.memory_space<vmem>>, vector<32x128xf32>
    %cst = arith.constant dense<0.000000e+00> : vector<32x128xf32>
    %2 = tpu.matmul %0, %1, %cst {dimension_numbers = #tpu.dot_dimension_numbers<[1], [0], [0], [1], [0, 0, 1, 1], [], []>} : vector<32x32xf32>, vector<32x128xf32>, vector<32x128xf32> -> vector<32x128xf32>
    %c0_3 = arith.constant 0 : index
    %c0_4 = arith.constant 0 : index
    %3 = vector.load %arg3[%c0_3, %c0_4] : memref<1x128xf32, #tpu.memory_space<vmem>>, vector<1x128xf32>
    %4 = vector.broadcast %3 : vector<1x128xf32> to vector<32x128xf32>
    %5 = arith.addf %2, %4 : vector<32x128xf32>
    %c0_5 = arith.constant 0 : index
    %c0_6 = arith.constant 0 : index
    %6 = vector.load %arg4[%c0_5, %c0_6] : memref<32x128xf32, #tpu.memory_space<vmem>>, vector<32x128xf32>
    tpu.vector_store %arg4[%c0_5, %c0_6], %5 {strides = array<i32>} : memref<32x128xf32, #tpu.memory_space<vmem>>, vector<32x128xf32>,
    return
  }
  func.func @transform_0(%arg0: i32) -> (i32, i32) {
    %c0_i32 = arith.constant 0 : i32
    %c0_i32_0 = arith.constant 0 : i32
    return %arg0, %c0_i32 : i32, i32
  }
  func.func @transform_1(%arg0: i32) -> (i32, i32) {
    %c0_i32 = arith.constant 0 : i32
    %c0_i32_0 = arith.constant 0 : i32
    %c0_i32_1 = arith.constant 0 : i32
    return %c0_i32, %c0_i32_0 : i32, i32
  }
  func.func @transform_2(%arg0: i32) -> (i32, i32) {
    %c0_i32 = arith.constant 0 : i32
    %c0_i32_0 = arith.constant 0 : i32
    %c0_i32_1 = arith.constant 0 : i32
    return %c0_i32, %c0_i32_0 : i32, i32
  }
  func.func @transform_3(%arg0: i32) -> (i32, i32) {
    %c0_i32 = arith.constant 0 : i32
    %c0_i32_0 = arith.constant 0 : i32
    return %arg0, %c0_i32 : i32, i32
  }
}

module attributes {stable_mosaic.version = 11 : i64} {
  func.func @_agg_norm_kernel(%arg0: i32, %arg1: memref<32x64xbf16, #tpu.memory_space<vmem>>, %arg2: memref<64x128xf32, #tpu.memory_space<vmem>>, %arg3: memref<32x128xf32, #tpu.memory_space<vmem>>, %arg4: memref<1x32xf32, #tpu.memory_space<vmem>>, %arg5: memref<1x32xf32, #tpu.memory_space<vmem>>, %arg6: memref<1x32xf32, #tpu.memory_space<vmem>>, %arg7: memref<1x32xf32, #tpu.memory_space<vmem>>, %arg8: memref<32x32xf32, #tpu.memory_space<vmem>>, %arg9: memref<32x32xf32, #tpu.memory_space<vmem>>, %arg10: memref<32x32xf32, #tpu.memory_space<vmem>>) attributes {dimension_semantics = [#tpu.dimension_semantics<parallel>], iteration_bounds = array<i64: 2>, scalar_prefetch = 0 : i64, scratch_operands = 0 : i64, tpu.core_type = #tpu.core_type<tc>, window_params = [{transform_indices = @transform_0, window_bounds = array<i64: 32, 64>}, {pipeline_mode = #tpu.pipeline_mode<synchronous>, transform_indices = @transform_1, window_bounds = array<i64: 64, 128>}, {transform_indices = @transform_2, window_bounds = array<i64: 32, 128>}, {pipeline_mode = #tpu.pipeline_mode<synchronous>, transform_indices = @transform_3, window_bounds = array<i64: 1, 32>}, {pipeline_mode = #tpu.pipeline_mode<synchronous>, transform_indices = @transform_4, window_bounds = array<i64: 1, 32>}, {pipeline_mode = #tpu.pipeline_mode<synchronous>, transform_indices = @transform_5, window_bounds = array<i64: 1, 32>}, {pipeline_mode = #tpu.pipeline_mode<synchronous>, transform_indices = @transform_6, window_bounds = array<i64: 1, 32>}, {transform_indices = @transform_7, window_bounds = array<i64: 32, 32>}, {transform_indices = @transform_8, window_bounds = array<i64: 32, 32>}, {transform_indices = @transform_9, window_bounds = array<i64: 32, 32>}]} {
    %c0 = arith.constant 0 : index
    %c0_0 = arith.constant 0 : index
    %0 = vector.load %arg3[%c0, %c0_0] : memref<32x128xf32, #tpu.memory_space<vmem>>, vector<32x128xf32>
    %1 = vector.extract_strided_slice %0 {offsets = [0, 0], sizes = [32, 32], strides = [1, 1]} : vector<32x128xf32> to vector<32x32xf32>
    %cst = arith.constant 0.000000e+00 : f32
    %2 = vector.broadcast %cst : f32 to vector<32x32xf32>
    %3 = arith.maximumf %1, %2 : vector<32x32xf32>
    %4 = vector.extract_strided_slice %0 {offsets = [0, 64], sizes = [32, 32], strides = [1, 1]} : vector<32x128xf32> to vector<32x32xf32>
    %c0_1 = arith.constant 0 : index
    %c0_2 = arith.constant 0 : index
    %5 = vector.load %arg2[%c0_1, %c0_2] : memref<64x128xf32, #tpu.memory_space<vmem>>, vector<64x128xf32>
    %6 = vector.extract_strided_slice %5 {offsets = [0, 32], sizes = [64, 32], strides = [1, 1]} : vector<64x128xf32> to vector<64x32xf32>
    %c0_3 = arith.constant 0 : index
    %c0_4 = arith.constant 0 : index
    %7 = vector.load %arg1[%c0_3, %c0_4] : memref<32x64xbf16, #tpu.memory_space<vmem>>, vector<32x64xbf16>
    %8 = arith.extf %7 : vector<32x64xbf16> to vector<32x64xf32>
    %cst_5 = arith.constant dense<0.000000e+00> : vector<32x32xf32>
    %9 = tpu.matmul %8, %6, %cst_5 {dimension_numbers = #tpu.dot_dimension_numbers<[1], [0], [0], [1], [0, 0, 1, 1], [], []>} : vector<32x64xf32>, vector<64x32xf32>, vector<32x32xf32> -> vector<32x32xf32>
    %10 = arith.addf %9, %4 : vector<32x32xf32>
    %c0_6 = arith.constant 0 : index
    %c0_7 = arith.constant 0 : index
    %11 = vector.load %arg4[%c0_6, %c0_7] : memref<1x32xf32, #tpu.memory_space<vmem>>, vector<1x32xf32>
    %12 = vector.broadcast %11 : vector<1x32xf32> to vector<32x32xf32>
    %13 = arith.mulf %10, %12 : vector<32x32xf32>
    %c0_8 = arith.constant 0 : index
    %c0_9 = arith.constant 0 : index
    %14 = vector.load %arg5[%c0_8, %c0_9] : memref<1x32xf32, #tpu.memory_space<vmem>>, vector<1x32xf32>
    %15 = vector.broadcast %14 : vector<1x32xf32> to vector<32x32xf32>
    %16 = arith.addf %13, %15 : vector<32x32xf32>
    %cst_10 = arith.constant 0.000000e+00 : f32
    %17 = vector.broadcast %cst_10 : f32 to vector<32x32xf32>
    %18 = arith.maximumf %16, %17 : vector<32x32xf32>
    %19 = arith.mulf %3, %18 : vector<32x32xf32>
    %cst_11 = arith.constant dense<0.000000e+00> : vector<32xf32>
    %20 = vector.multi_reduction <add>, %19, %cst_11 [1] : vector<32x32xf32> to vector<32xf32>
    %21 = vector.shape_cast %20 : vector<32xf32> to vector<32x1xf32>
    %cst_12 = arith.constant 3.200000e+01 : f32
    %22 = vector.broadcast %cst_12 : f32 to vector<32x1xf32>
    %23 = arith.divf %21, %22 : vector<32x1xf32>
    %24 = vector.broadcast %23 : vector<32x1xf32> to vector<32x32xf32>
    %25 = arith.subf %19, %24 : vector<32x32xf32>
    %26 = arith.mulf %25, %25 : vector<32x32xf32>
    %cst_13 = arith.constant dense<0.000000e+00> : vector<32xf32>
    %27 = vector.multi_reduction <add>, %26, %cst_13 [1] : vector<32x32xf32> to vector<32xf32>
    %28 = vector.shape_cast %27 : vector<32xf32> to vector<32x1xf32>
    %cst_14 = arith.constant 3.200000e+01 : f32
    %29 = vector.broadcast %cst_14 : f32 to vector<32x1xf32>
    %30 = arith.divf %28, %29 : vector<32x1xf32>
    %cst_15 = arith.constant 9.99999974E-6 : f32
    %31 = vector.broadcast %cst_15 : f32 to vector<32x1xf32>
    %32 = arith.addf %30, %31 : vector<32x1xf32>
    %33 = math.rsqrt %32 : vector<32x1xf32>
    %34 = vector.broadcast %33 : vector<32x1xf32> to vector<32x32xf32>
    %35 = arith.mulf %25, %34 : vector<32x32xf32>
    %c0_16 = arith.constant 0 : index
    %c0_17 = arith.constant 0 : index
    %36 = vector.load %arg6[%c0_16, %c0_17] : memref<1x32xf32, #tpu.memory_space<vmem>>, vector<1x32xf32>
    %37 = vector.broadcast %36 : vector<1x32xf32> to vector<32x32xf32>
    %38 = arith.mulf %35, %37 : vector<32x32xf32>
    %c0_18 = arith.constant 0 : index
    %c0_19 = arith.constant 0 : index
    %39 = vector.load %arg7[%c0_18, %c0_19] : memref<1x32xf32, #tpu.memory_space<vmem>>, vector<1x32xf32>
    %40 = vector.broadcast %39 : vector<1x32xf32> to vector<32x32xf32>
    %41 = arith.addf %38, %40 : vector<32x32xf32>
    %cst_20 = arith.constant 0.899999976 : f32
    %42 = vector.broadcast %cst_20 : f32 to vector<32x32xf32>
    %43 = arith.mulf %42, %18 : vector<32x32xf32>
    %44 = arith.addf %41, %43 : vector<32x32xf32>
    %c0_21 = arith.constant 0 : index
    %c0_22 = arith.constant 0 : index
    %45 = vector.load %arg9[%c0_21, %c0_22] : memref<32x32xf32, #tpu.memory_space<vmem>>, vector<32x32xf32>
    tpu.vector_store %arg9[%c0_21, %c0_22], %44 {strides = array<i32>} : memref<32x32xf32, #tpu.memory_space<vmem>>, vector<32x32xf32>,
    %c0_23 = arith.constant 0 : index
    %c0_24 = arith.constant 0 : index
    %46 = vector.load %arg8[%c0_23, %c0_24] : memref<32x32xf32, #tpu.memory_space<vmem>>, vector<32x32xf32>
    %47 = arith.addf %46, %44 : vector<32x32xf32>
    %c0_25 = arith.constant 0 : index
    %c0_26 = arith.constant 0 : index
    %48 = vector.load %arg10[%c0_25, %c0_26] : memref<32x32xf32, #tpu.memory_space<vmem>>, vector<32x32xf32>
    tpu.vector_store %arg10[%c0_25, %c0_26], %47 {strides = array<i32>} : memref<32x32xf32, #tpu.memory_space<vmem>>, vector<32x32xf32>,
    return
  }
  func.func @transform_0(%arg0: i32) -> (i32, i32) {
    %c0_i32 = arith.constant 0 : i32
    %c0_i32_0 = arith.constant 0 : i32
    return %arg0, %c0_i32 : i32, i32
  }
  func.func @transform_1(%arg0: i32) -> (i32, i32) {
    %c0_i32 = arith.constant 0 : i32
    %c0_i32_0 = arith.constant 0 : i32
    %c0_i32_1 = arith.constant 0 : i32
    return %c0_i32, %c0_i32_0 : i32, i32
  }
  func.func @transform_2(%arg0: i32) -> (i32, i32) {
    %c0_i32 = arith.constant 0 : i32
    %c0_i32_0 = arith.constant 0 : i32
    return %arg0, %c0_i32 : i32, i32
  }
  func.func @transform_3(%arg0: i32) -> (i32, i32) {
    %c0_i32 = arith.constant 0 : i32
    %c0_i32_0 = arith.constant 0 : i32
    %c0_i32_1 = arith.constant 0 : i32
    return %c0_i32, %c0_i32_0 : i32, i32
  }
  func.func @transform_4(%arg0: i32) -> (i32, i32) {
    %c0_i32 = arith.constant 0 : i32
    %c0_i32_0 = arith.constant 0 : i32
    %c0_i32_1 = arith.constant 0 : i32
    return %c0_i32, %c0_i32_0 : i32, i32
  }
  func.func @transform_5(%arg0: i32) -> (i32, i32) {
    %c0_i32 = arith.constant 0 : i32
    %c0_i32_0 = arith.constant 0 : i32
    %c0_i32_1 = arith.constant 0 : i32
    return %c0_i32, %c0_i32_0 : i32, i32
  }
  func.func @transform_6(%arg0: i32) -> (i32, i32) {
    %c0_i32 = arith.constant 0 : i32
    %c0_i32_0 = arith.constant 0 : i32
    %c0_i32_1 = arith.constant 0 : i32
    return %c0_i32, %c0_i32_0 : i32, i32
  }
  func.func @transform_7(%arg0: i32) -> (i32, i32) {
    %c0_i32 = arith.constant 0 : i32
    %c0_i32_0 = arith.constant 0 : i32
    return %arg0, %c0_i32 : i32, i32
  }
  func.func @transform_8(%arg0: i32) -> (i32, i32) {
    %c0_i32 = arith.constant 0 : i32
    %c0_i32_0 = arith.constant 0 : i32
    return %arg0, %c0_i32 : i32, i32
  }
  func.func @transform_9(%arg0: i32) -> (i32, i32) {
    %c0_i32 = arith.constant 0 : i32
    %c0_i32_0 = arith.constant 0 : i32
    return %arg0, %c0_i32 : i32, i32
  }
}

module attributes {stable_mosaic.version = 11 : i64} {
  func.func @_pred_kernel(%arg0: i32, %arg1: memref<32x32xf32, #tpu.memory_space<vmem>>, %arg2: memref<32x128xf32, #tpu.memory_space<vmem>>, %arg3: memref<1x128xf32, #tpu.memory_space<vmem>>, %arg4: memref<32x128xf32, #tpu.memory_space<vmem>>) attributes {dimension_semantics = [#tpu.dimension_semantics<parallel>], iteration_bounds = array<i64: 2>, scalar_prefetch = 0 : i64, scratch_operands = 0 : i64, tpu.core_type = #tpu.core_type<tc>, window_params = [{transform_indices = @transform_0, window_bounds = array<i64: 32, 32>}, {pipeline_mode = #tpu.pipeline_mode<synchronous>, transform_indices = @transform_1, window_bounds = array<i64: 32, 128>}, {pipeline_mode = #tpu.pipeline_mode<synchronous>, transform_indices = @transform_2, window_bounds = array<i64: 1, 128>}, {transform_indices = @transform_3, window_bounds = array<i64: 32, 128>}]} {
    %c0 = arith.constant 0 : index
    %c0_0 = arith.constant 0 : index
    %0 = vector.load %arg1[%c0, %c0_0] : memref<32x32xf32, #tpu.memory_space<vmem>>, vector<32x32xf32>
    %c0_1 = arith.constant 0 : index
    %c0_2 = arith.constant 0 : index
    %1 = vector.load %arg2[%c0_1, %c0_2] : memref<32x128xf32, #tpu.memory_space<vmem>>, vector<32x128xf32>
    %cst = arith.constant dense<0.000000e+00> : vector<32x128xf32>
    %2 = tpu.matmul %0, %1, %cst {dimension_numbers = #tpu.dot_dimension_numbers<[1], [0], [0], [1], [0, 0, 1, 1], [], []>} : vector<32x32xf32>, vector<32x128xf32>, vector<32x128xf32> -> vector<32x128xf32>
    %c0_3 = arith.constant 0 : index
    %c0_4 = arith.constant 0 : index
    %3 = vector.load %arg3[%c0_3, %c0_4] : memref<1x128xf32, #tpu.memory_space<vmem>>, vector<1x128xf32>
    %4 = vector.broadcast %3 : vector<1x128xf32> to vector<32x128xf32>
    %5 = arith.addf %2, %4 : vector<32x128xf32>
    %cst_5 = arith.constant dense<0xFF800000> : vector<32xf32>
    %6 = vector.multi_reduction <maximumf>, %5, %cst_5 [1] : vector<32x128xf32> to vector<32xf32>
    %7 = vector.shape_cast %6 : vector<32xf32> to vector<32x1xf32>
    %8 = vector.broadcast %7 : vector<32x1xf32> to vector<32x128xf32>
    %9 = arith.subf %5, %8 : vector<32x128xf32>
    %10 = math.exp %9 : vector<32x128xf32>
    %cst_6 = arith.constant dense<0.000000e+00> : vector<32xf32>
    %11 = vector.multi_reduction <add>, %10, %cst_6 [1] : vector<32x128xf32> to vector<32xf32>
    %12 = vector.shape_cast %11 : vector<32xf32> to vector<32x1xf32>
    %13 = math.log %12 : vector<32x1xf32>
    %14 = arith.addf %13, %7 : vector<32x1xf32>
    %15 = vector.broadcast %14 : vector<32x1xf32> to vector<32x128xf32>
    %16 = arith.subf %5, %15 : vector<32x128xf32>
    %c0_7 = arith.constant 0 : index
    %c0_8 = arith.constant 0 : index
    %17 = vector.load %arg4[%c0_7, %c0_8] : memref<32x128xf32, #tpu.memory_space<vmem>>, vector<32x128xf32>
    tpu.vector_store %arg4[%c0_7, %c0_8], %16 {strides = array<i32>} : memref<32x128xf32, #tpu.memory_space<vmem>>, vector<32x128xf32>,
    return
  }
  func.func @transform_0(%arg0: i32) -> (i32, i32) {
    %c0_i32 = arith.constant 0 : i32
    %c0_i32_0 = arith.constant 0 : i32
    return %arg0, %c0_i32 : i32, i32
  }
  func.func @transform_1(%arg0: i32) -> (i32, i32) {
    %c0_i32 = arith.constant 0 : i32
    %c0_i32_0 = arith.constant 0 : i32
    %c0_i32_1 = arith.constant 0 : i32
    return %c0_i32, %c0_i32_0 : i32, i32
  }
  func.func @transform_2(%arg0: i32) -> (i32, i32) {
    %c0_i32 = arith.constant 0 : i32
    %c0_i32_0 = arith.constant 0 : i32
    %c0_i32_1 = arith.constant 0 : i32
    return %c0_i32, %c0_i32_0 : i32, i32
  }
  func.func @transform_3(%arg0: i32) -> (i32, i32) {
    %c0_i32 = arith.constant 0 : i32
    %c0_i32_0 = arith.constant 0 : i32
    return %arg0, %c0_i32 : i32, i32
  }
}

</mosaic_0001>

<bundles_post_ra>
// kernel: polynormer_forward.17
= control target key start
LH: loop header
LB: loop body
LE: loop exit
PB: predicated region body
PF: predicated region fallthrough
CT: control target
= control target key end

     0   :  { %8 = vsyncpa [#allocation3], 0  ;;  %s1002_s0 = inlined_call_operand.hbm [shape: f32[64,32], index: 0, kind: input, shape index: {}]   ;;  %s1003_s1 = inlined_call_operand.hbm [shape: f32[32,128], index: 1, kind: input, shape index: {}]   ;;  %s1004_s2 = inlined_call_operand.hbm [shape: f32[1,128], index: 2, kind: input, shape index: {}]   ;;  %s1005_s3 = inlined_call_operand.hbm [shape: f32[64,128], index: 3, kind: output, shape index: {}]  }
   0x1   :  { %10 = vsyncpa [#allocation3 + $0x1], 0 }
   0x2   :  { %11 = vsyncpa [#allocation6], 0 }
   0x3   :  { %12 = vsyncpa [#allocation4], 0 }
   0x4   :  { %14 = vsyncpa [#allocation4 + $0x1], 0  ;;  %s757_s12 = smov 0   ;;  %s759_s13 = smov 0  }
   0x5   :  { %s761_s14 = smov 0   ;;  %s763_s15 = smov 0  }
   0x6 LB: > { %s778_s16 = sadd.s32 4294967295, %s727_s15   ;;  %s441_s17 = sadd.s32 4294967294, %s727_s15   ;;  %s727_s15 = sphi %s763_s15, %s1025_s15   ;;  %s723_s14 = sphi %s761_s14, %s1024_s14   ;;  %s719_s13 = sphi %s759_s13, %s1023_s13   ;;  %s715_s12 = sphi %s757_s12, %s1022_s12  }
   0x7   : > { %p40_p0 = scmp.ne.s32.totalorder %s719_s13, %s715_s12  ;;  %p1006_p1 = scmp.eq.s32.totalorder %s778_s16, 0 }
   0x8   : > { %p112_p3 = scmp.eq.s32.totalorder %s441_s17, 1  ;;  %p442_p5 = scmp.ge.s32.totalorder %s727_s15, 1 }
   0x9   : > { %p787_p4 = por %p1006_p1, %p40_p0  ;;  %p119_p7 = scmp.lt.s32.totalorder %s727_s15, 3 }
   0xa   : > { %p792_p6 = por %p112_p3, %p40_p0  ;;  %s729_s21 = smov [#allocation5]  }
   0xb   : > { %s1009_s18 = scalar_select %p787_p4, 1, 0 }
   0xc   : > { %s1010_s19 = scalar_select %p792_p6, 1, 0 }
   0xd   : > { %p797_p8 = pnand %p442_p5, %p119_p7  ;;  %s131_s22 = sshll.u32 %s729_s21, 4  ;;  %s801_s22 = int_to_ptr.vmem [resolvable:$true] %s131_s22 }
   0xe   : > { %s730_s24 = smov [#allocation7]   ;;  %s571_s28 = scalar_lea.hbm %s1003_s1, 512 }
   0xf   : > { %p512_p9 = pneg %p797_p8  ;;  %s145_s25 = sshll.u32 %s730_s24, 4  ;;  %s812_s25 = int_to_ptr.vmem [resolvable:$true] %s145_s25 }
  0x10   : > { %p572_p12 = scmp.ne.s32.totalorder %s1003_s1, %s571_s28  ;;  %p578_p5 = scmp.lt.u32.totalorder %s571_s28, %s1003_s1 }
  0x11   : > { %p808_p11 = pnand %p512_p9, %p1006_p1 }
  0x13   : > { %p573_p13 = pneg %p808_p11 }
  0x15   : > { %p574_p0 = pnand %p573_p13, %p572_p12 }
  0x17   : > { %p575_p3 = pneg %p574_p0 }
  0x19   : > { %p580_p7 = pnand %p578_p5, %p575_p3 }
  0x1b   : > { %583 = shalt.err (!%p580_p7)
}
  0x1c   : > { %s584_s6 = scalar_lea.vmem %s801_s22, 512  ;;  %p592_p2 = scmp.lt.s32.totalorder %s801_s22, %s801_s22 }
  0x1d   : > { %p585_p9 = scmp.ne.s32.totalorder %s801_s22, %s584_s6  ;;  %p593_p12 = scmp.lt.s32.totalorder %s584_s6, %s584_s6 }
  0x1f   : > { %p587_p10 = pnand %p585_p9, %p573_p13  ;;  %p594_p0 = por %p593_p12, %p592_p2 }
  0x21   : > { %p588_p1 = pneg %p587_p10 }
  0x23   : > { %p595_p6 = pnand %p594_p0, %p588_p1 }
  0x25   : > { %598 = shalt.err (!%p595_p6)
}
  0x26   : > { %s731_s7 = smov 128   ;;  %s732_s8 = smov 8  }
  0x27   : > { %515 = dma.hbm_to_vmem [thread:$0]  (!%p808_p11), %s1003_s1, 512, %s801_s22, [#allocation6], %s731_s7, %s731_s7, %s732_s8  }
  0x28   : > { %s599_s21 = scalar_lea.hbm %s1004_s2, 16 }
  0x29   : > { %p600_p1 = scmp.ne.s32.totalorder %s1004_s2, %s599_s21  ;;  %p606_p10 = scmp.lt.u32.totalorder %s599_s21, %s1004_s2 }
  0x2b   : > { %p602_p2 = pnand %p600_p1, %p573_p13 }
  0x2d   : > { %p603_p6 = pneg %p602_p2 }
  0x2f   : > { %p608_p3 = pnand %p606_p10, %p603_p6 }
  0x31   : > { %611 = shalt.err (!%p608_p3)
}
  0x32   : > { %s612_s22 = scalar_lea.vmem %s812_s25, 16  ;;  %s619_s29 = scalar_lea.vmem %s812_s25, 32 }
  0x33   : > { %p613_p5 = scmp.ne.s32.totalorder %s812_s25, %s612_s22  ;;  %p620_p12 = scmp.lt.s32.totalorder %s812_s25, %s812_s25 }
  0x34   : > { %p621_p0 = scmp.lt.s32.totalorder %s619_s29, %s612_s22 }
  0x35   : > { %p615_p7 = pnand %p613_p5, %p573_p13 }
  0x36   : > { %p622_p1 = por %p621_p0, %p620_p12 }
  0x37   : > { %p616_p9 = pneg %p615_p7 }
  0x39   : > { %p623_p2 = pnand %p622_p1, %p616_p9 }
  0x3b   : > { %626 = shalt.err (!%p623_p2)
}
  0x3c   : > { %518 = dma.hbm_to_vmem [thread:$0]  (!%p808_p11), %s1004_s2, 16, %s812_s25, [#allocation6]  }
  0x3d   : > { %s871_s5 = sadd.s32 1, %s727_s15   ;;  %s27_s23 = sadd.s32 1, %s723_s14 }
  0x3e   : > { %s24_s6 = ssub.s32 %s727_s15, %s871_s5  ;;  %p34_p13 = scmp.ne.s32.totalorder %s723_s14, %s719_s13 }
  0x3f   : > { %p25_p6 = scmp.eq.s32.totalorder %s24_s6, 0  ;;  %p35_p10 = scmp.eq.s32.totalorder %s727_s15, 0 }
  0x40   : > { %p1013_p3 = scmp.eq.s32.totalorder %s778_s16, 1  ;;  %p529_p7 = scmp.lt.s32.totalorder %s727_s15, 2 }
  0x41   : > { %s887_s10 = scalar_select %p25_p6, %s723_s14, %s27_s23  }
  0x42   : > { %p881_p5 = por %p1013_p3, %p34_p13  ;;  %p36_p9 = por %p35_p10, %p34_p13 }
  0x43   : > { %s156_s11 = sand.u32 1, %s723_s14   ;;  %s464_s25 = sshll.u32 %s727_s15, 9 }
  0x44   : > { %s1014_s9 = scalar_select %p881_p5, 1, 0 }
  0x45   : > { %s446_s17 = sshll.u32 %s156_s11, 5  ;;  %s894_s26 = scalar_lea.hbm %s1002_s0, %s464_s25 }
  0x46   : > { %s160_s27 = scalar_lea.vmem [#allocation2], %s446_s17  ;;  %p898_p11 = pnand %p529_p7, %p36_p9 }
  0x47   : > { %s167_s28 = sshll.u32 %s160_s27, 4  ;;  %s902_s29 = scalar_lea.sflag [#allocation3], %s156_s11  ;;  %s896_s28 = int_to_ptr.vmem [resolvable:$true] %s167_s28 }
  0x48   : > { %s627_s30 = scalar_lea.hbm %s894_s26, 512  ;;  %p629_p0 = pneg %p898_p11 }
  0x49   : > { %p628_p12 = scmp.ne.s32.totalorder %s894_s26, %s627_s30  ;;  %s632_s6 = scalar_lea.hbm %s1002_s0, 1024 }
  0x4a   : > { %p633_p13 = scmp.lt.u32.totalorder %s894_s26, %s1002_s0  ;;  %p634_p6 = scmp.lt.u32.totalorder %s632_s6, %s627_s30 }
  0x4b   : > { %p630_p1 = pnand %p629_p0, %p628_p12  ;;  %p636_p3 = scmp.lt.u32.totalorder %s627_s30, %s894_s26 }
  0x4c   : > { %p635_p10 = por %p634_p6, %p633_p13 }
  0x4d   : > { %p631_p2 = pneg %p630_p1 }
  0x4e   : > { %p637_p7 = por %p636_p3, %p635_p10 }
  0x50   : > { %p638_p9 = pnand %p637_p7, %p631_p2 }
  0x52   : > { %641 = shalt.err (!%p638_p9)
}
  0x53   : > { %s642_s11 = scalar_lea.vmem %s896_s28, 512  ;;  %s733_s21 = smov [#allocation2]  }
  0x54   : > { %p643_p12 = scmp.ne.s32.totalorder %s896_s28, %s642_s11  ;;  %s647_s24 = sshll.u32 %s733_s21, 4  ;;  %s648_s24 = int_to_ptr.vmem [resolvable:$false] %s647_s24 }
  0x55   : > { %s649_s27 = scalar_lea.vmem %s648_s24, 1024  ;;  %p650_p4 = scmp.lt.s32.totalorder %s896_s28, %s648_s24 }
  0x56   : > { %p645_p1 = pnand %p643_p12, %p629_p0  ;;  %p651_p13 = scmp.lt.s32.totalorder %s649_s27, %s642_s11 }
  0x58   : > { %p646_p5 = pneg %p645_p1  ;;  %p652_p6 = por %p651_p13, %p650_p4 }
  0x5a   : > { %p653_p10 = pnand %p652_p6, %p646_p5 }
  0x5c   : > { %656 = shalt.err (!%p653_p10)
}
  0x5d   : > { %522 = dma.hbm_to_vmem [thread:$0]  (!%p898_p11), %s894_s26, 512, %s896_s28, %s902_s29, %s731_s7, %s731_s7, %s732_s8  }
  0x5e   : > { %179 = sbr.rel (%p797_p8) target bundleno = 347 (0x15b), region = 32  ;;  %s936_s30 = sand.u32 (!%p797_p8), 1, %s719_s13  }
  0x5f   : > { %s450_s4 = sshll.u32 (!%p797_p8), %s936_s30, 5  ;;  %s182_s23 = scalar_lea.sflag (!%p797_p8), [#allocation3], %s936_s30 }
  0x60   : > { %s185_s6 = scalar_lea.vmem (!%p797_p8), [#allocation2], %s450_s4  ;;  %p1016_p4 = scmp.ne.s32.totalorder (!%p797_p8), %s1009_s18, 0 }
  0x65   : > { %702 = dma.done.wait (%p1016_p4), %s182_s23, 512  }
  0x66   : > { %704 = vsyncadd (%p1016_p4), %s182_s23, 4294966784  ;;  %p1017_p5 = scmp.eq.s32.totalorder %s778_s16, 0 }
  0x68   : > { %706 = dma.done.wait (%p1017_p5), [#allocation6], 528   ;;  %p1018_p11 = pmov %p1017_p5 }
  0x69   : > { %vm233_vm0 = vcmask 261120   ;;  %v222_v0 = vld [vmem:[#allocation5] sm:$0xff]  ;;  %v223_v1 = vld [vmem:[#allocation5 + $0x8] sm:$0xff]  ;;  %v224_v2 = vld [vmem:[#allocation5 + $0x10] sm:$0xff]  ;;  %s215_s18 = scalar_lea.vmem [#allocation8], %s450_s4  ;;  %s465_s7 = sshll.u32 %s778_s16, 9 }
  0x6a   : > { %708 = vsyncadd (%p1018_p11), [#allocation6], 4294966768  ;;  %v488_v3 = vpack.c.bf16 %v223_v1, %v222_v0  ;;  %v225_v4 = vld [vmem:[#allocation5 + $0x18] sm:$0xff]  ;;  %v218_v5 = vld [vmem:[%s185_s6] sm:$0xff]  ;;  %s349_s20 = sshll.u32 %s215_s18, 4  ;;  %s958_s28 = scalar_lea.hbm %s1005_s3, %s465_s7  ;;  %s953_s20 = int_to_ptr.vmem [resolvable:$true] %s349_s20 }
  0x6b   : > { %v220_v6 = vld [vmem:[%s185_s6 + $0x10] sm:$0xff]  ;;  %v492_v7 = vpack.c.bf16 %v225_v4, %v224_v2  ;;  %482 = vmatprep.mubr.msk.f32.mxu0 %vm233_vm0, %v218_v5  ;;  %v219_v8 = vld [vmem:[%s185_s6 + $0x8] sm:$0xff]  ;;  %v221_v9 = vld [vmem:[%s185_s6 + $0x18] sm:$0xff]  ;;  %s336_s16 = scalar_lea.sflag [#allocation4], %s936_s30  ;;  %s657_s22 = scalar_lea.vmem %s953_s20, 512 }
  0x6c   : > { %485 = vmatprep.mubr.msk.f32.mxu1 %vm233_vm0, %v220_v6  ;;  %489 = vmatprep.subr.bf16.mxu0 %v488_v3  ;;  %v454_v10 = vld [vmem:[#allocation7] ss:$0 sm:$0xff]  ;;  %p658_p8 = scmp.ne.s32.totalorder %s953_s20, %s657_s22  ;;  %p1019_p0 = scmp.ne.s32.totalorder %s1014_s9, 0 }
  0x6d   : > { %496 = vmatprep.subr.bf16.mxu1 %v488_v3  ;;  %491 = vmatpush3.bf16.msra.mxu0 %v488_v3  ;;  %s734_s29 = smov [#allocation8]  }
  0x6e   : > { %498 = vmatpush3.bf16.msra.mxu1 %v488_v3  ;;  %493 = vmatprep.subr.bf16.mxu0 %v492_v7  ;;  %p659_p2 = pnand %p658_p8, %p1019_p0  ;;  %s661_s17 = sshll.u32 %s734_s29, 4  ;;  %s662_s17 = int_to_ptr.vmem [resolvable:$false] %s661_s17 }
  0x6f   : > { %497 = vmatprep.subr.bf16.mxu1 %v492_v7  ;;  %s663_s25 = scalar_lea.vmem %s662_s17, 1024  ;;  %p664_p7 = scmp.lt.s32.totalorder %s953_s20, %s662_s17 }
  0x70   : > { %p660_p3 = pneg %p659_p2  ;;  %p665_p9 = scmp.lt.s32.totalorder %s663_s25, %s657_s22 }
  0x71   : > { %495 = vmatpush3.bf16.msra.mxu0 %v492_v7 }
  0x72   : > { %499 = vmatpush3.bf16.msra.mxu1 %v492_v7  ;;  %p666_p12 = por %p665_p9, %p664_p7 }
  0x74   : > { %483 = vmatmul.mubr.msk.f32.vlgmr.msra.gmra.mrb[0].mxu0 %vm233_vm0, %v219_v8  ;;  %p667_p1 = pnand %p666_p12, %p660_p3 }
  0x75   : > { %486 = vmatmul.mubr.msk.f32.vlgmr.msra.gmra.mrb[0].mxu1 %vm233_vm0, %v221_v9 }
 0x147   : > { %v484_v11 = vpop.f32.mrb[0].mxu0 }
 0x148   : > { %v487_v12 = vpop.f32.mrb[0].mxu1  ;;  %v318_v13 = vadd.f32 %v484_v11, %v454_v10  ;;  %v312_v15 = vpop.f32.mrb[1].mxu0 }
 0x149   : > { %v328_v14 = vadd.f32 %v487_v12, %v454_v10  ;;  %v322_v16 = vpop.f32.mrb[1].mxu1  ;;  %v313_v17 = vadd.f32 %v454_v10, %v312_v15 }
 0x14a   : > { %v323_v18 = vadd.f32 %v454_v10, %v322_v16  ;;  %332 = vst [vmem:[%s215_s18 + $0x8] sm:$0xff] %v318_v13 }
 0x14b   : > { %334 = vst [vmem:[%s215_s18 + $0x18] sm:$0xff] %v328_v14  ;;  %331 = vst [vmem:[%s215_s18] sm:$0xff] %v313_v17 }
 0x14c   : > { %333 = vst [vmem:[%s215_s18 + $0x10] sm:$0xff] %v323_v18 }
 0x14d   : > { %670 = shalt.err (!%p667_p1)
}
 0x14e   : > { %s671_s11 = scalar_lea.hbm %s958_s28, 512  ;;  %s675_s27 = scalar_lea.hbm %s1005_s3, 1024 }
 0x14f   : > { %p672_p13 = scmp.ne.s32.totalorder %s958_s28, %s671_s11  ;;  %p676_p4 = scmp.lt.u32.totalorder %s958_s28, %s1005_s3 }
 0x150   : > { %p677_p5 = scmp.lt.u32.totalorder %s675_s27, %s671_s11  ;;  %p679_p8 = scmp.lt.u32.totalorder %s671_s11, %s958_s28 }
 0x151   : > { %p673_p6 = pnand %p672_p13, %p1019_p0 }
 0x152   : > { %p678_p11 = por %p677_p5, %p676_p4 }
 0x153   : > { %p674_p10 = pneg %p673_p6 }
 0x154   : > { %p680_p2 = por %p679_p8, %p678_p11 }
 0x156   : > { %p681_p3 = pnand %p680_p2, %p674_p10 }
 0x158   : > { %684 = shalt.err (!%p681_p3)
}
 0x159   : > { %s735_s6 = smov 128   ;;  %s736_s18 = smov 8  }
 0x15a   : > { %510 = dma.vmem_to_hbm [thread:$0]  (%p1019_p0), %s953_s20, 512, %s958_s28, %s336_s16, %s735_s6, %s735_s6, %s736_s18  }
 0x15b PF: > { %s364_s7 = sand.u32 1, %s715_s12   ;;  %p1020_p7 = scmp.ne.s32.totalorder %s1010_s19, 0 }
 0x15c   : > { %p1021_p9 = scmp.ge.s32.totalorder %s727_s15, 2  ;;  %s365_s8 = scalar_lea.sflag [#allocation4], %s364_s7 }
 0x15e   : > { %p524_p12 = pnand %p1021_p9, %p1020_p7 }
 0x160   : > { %710 = dma.done.wait (!%p524_p12), %s365_s8, 512  }
 0x161   : > { %712 = vsyncadd (!%p524_p12), %s365_s8, 4294966784  ;;  %p17_p1 = scmp.ge.s32.totalorder %s871_s5, 4   ;;  %s1022_s12 = smov %s719_s13 }
 0x162   : > { %s1023_s13 = smov %s723_s14  ;;  %s1024_s14 = smov %s887_s10 }
 0x163   : > { %s1025_s15 = smov %s871_s5  ;;  %19 = sbr.rel (!%p17_p1) target bundleno = 6 (0x6), region = 85 }
 0x16a   :  { %370 = vsyncpa [#allocation3], 1 }
 0x16b   :  { %372 = vsyncpa [#allocation3 + $0x1], 1 }
 0x16c   :  { %373 = vsyncpa [#allocation6], 1 }
 0x16d   :  { %374 = vsyncpa [#allocation4], 1 }
 0x16e   :  { %376 = vsyncpa [#allocation4 + $0x1], 1 }

// kernel: polynormer_forward.15
= control target key start
LH: loop header
LB: loop body
LE: loop exit
PB: predicated region body
PF: predicated region fallthrough
CT: control target
= control target key end

     0   :  { %8 = vsyncpa [#allocation3], 0  ;;  %s984_s0 = inlined_call_operand.hbm [shape: f32[64,16], index: 0, kind: input, shape index: {}]   ;;  %s985_s1 = inlined_call_operand.hbm [shape: f32[16,128], index: 1, kind: input, shape index: {}]   ;;  %s986_s2 = inlined_call_operand.hbm [shape: f32[1,128], index: 2, kind: input, shape index: {}]   ;;  %s987_s3 = inlined_call_operand.hbm [shape: f32[64,128], index: 3, kind: output, shape index: {}]  }
   0x1   :  { %10 = vsyncpa [#allocation3 + $0x1], 0 }
   0x2   :  { %11 = vsyncpa [#allocation6], 0 }
   0x3   :  { %12 = vsyncpa [#allocation4], 0 }
   0x4   :  { %14 = vsyncpa [#allocation4 + $0x1], 0  ;;  %s743_s12 = smov 0   ;;  %s745_s13 = smov 0  }
   0x5   :  { %s747_s14 = smov 0   ;;  %s749_s15 = smov 0  }
   0x6 LB: > { %s764_s16 = sadd.s32 4294967295, %s713_s15   ;;  %s439_s17 = sadd.s32 4294967294, %s713_s15   ;;  %s713_s15 = sphi %s749_s15, %s1007_s15   ;;  %s709_s14 = sphi %s747_s14, %s1006_s14   ;;  %s705_s13 = sphi %s745_s13, %s1005_s13   ;;  %s701_s12 = sphi %s743_s12, %s1004_s12  }
   0x7   : > { %p40_p0 = scmp.ne.s32.totalorder %s705_s13, %s701_s12  ;;  %p988_p1 = scmp.eq.s32.totalorder %s764_s16, 0 }
   0x8   : > { %p112_p3 = scmp.eq.s32.totalorder %s439_s17, 1  ;;  %p440_p5 = scmp.ge.s32.totalorder %s713_s15, 1 }
   0x9   : > { %p773_p4 = por %p988_p1, %p40_p0  ;;  %p119_p7 = scmp.lt.s32.totalorder %s713_s15, 3 }
   0xa   : > { %p778_p6 = por %p112_p3, %p40_p0  ;;  %s715_s21 = smov [#allocation5]  }
   0xb   : > { %s991_s18 = scalar_select %p773_p4, 1, 0 }
   0xc   : > { %s992_s19 = scalar_select %p778_p6, 1, 0 }
   0xd   : > { %p783_p8 = pnand %p440_p5, %p119_p7  ;;  %s131_s22 = sshll.u32 %s715_s21, 4  ;;  %s787_s22 = int_to_ptr.vmem [resolvable:$true] %s131_s22 }
   0xe   : > { %s716_s24 = smov [#allocation7]   ;;  %s557_s28 = scalar_lea.hbm %s985_s1, 256 }
   0xf   : > { %p498_p9 = pneg %p783_p8  ;;  %s145_s25 = sshll.u32 %s716_s24, 4  ;;  %s798_s25 = int_to_ptr.vmem [resolvable:$true] %s145_s25 }
  0x10   : > { %p558_p12 = scmp.ne.s32.totalorder %s985_s1, %s557_s28  ;;  %p564_p5 = scmp.lt.u32.totalorder %s557_s28, %s985_s1 }
  0x11   : > { %p794_p11 = pnand %p498_p9, %p988_p1 }
  0x13   : > { %p559_p13 = pneg %p794_p11 }
  0x15   : > { %p560_p0 = pnand %p559_p13, %p558_p12 }
  0x17   : > { %p561_p3 = pneg %p560_p0 }
  0x19   : > { %p566_p7 = pnand %p564_p5, %p561_p3 }
  0x1b   : > { %569 = shalt.err (!%p566_p7)
}
  0x1c   : > { %s570_s6 = scalar_lea.vmem %s787_s22, 256  ;;  %p578_p2 = scmp.lt.s32.totalorder %s787_s22, %s787_s22 }
  0x1d   : > { %p571_p9 = scmp.ne.s32.totalorder %s787_s22, %s570_s6  ;;  %p579_p12 = scmp.lt.s32.totalorder %s570_s6, %s570_s6 }
  0x1f   : > { %p573_p10 = pnand %p571_p9, %p559_p13  ;;  %p580_p0 = por %p579_p12, %p578_p2 }
  0x21   : > { %p574_p1 = pneg %p573_p10 }
  0x23   : > { %p581_p6 = pnand %p580_p0, %p574_p1 }
  0x25   : > { %584 = shalt.err (!%p581_p6)
}
  0x26   : > { %s717_s7 = smov 128   ;;  %s718_s8 = smov 8  }
  0x27   : > { %501 = dma.hbm_to_vmem [thread:$0]  (!%p794_p11), %s985_s1, 256, %s787_s22, [#allocation6], %s717_s7, %s717_s7, %s718_s8  }
  0x28   : > { %s585_s21 = scalar_lea.hbm %s986_s2, 16 }
  0x29   : > { %p586_p1 = scmp.ne.s32.totalorder %s986_s2, %s585_s21  ;;  %p592_p10 = scmp.lt.u32.totalorder %s585_s21, %s986_s2 }
  0x2b   : > { %p588_p2 = pnand %p586_p1, %p559_p13 }
  0x2d   : > { %p589_p6 = pneg %p588_p2 }
  0x2f   : > { %p594_p3 = pnand %p592_p10, %p589_p6 }
  0x31   : > { %597 = shalt.err (!%p594_p3)
}
  0x32   : > { %s598_s22 = scalar_lea.vmem %s798_s25, 16  ;;  %s605_s29 = scalar_lea.vmem %s798_s25, 32 }
  0x33   : > { %p599_p5 = scmp.ne.s32.totalorder %s798_s25, %s598_s22  ;;  %p606_p12 = scmp.lt.s32.totalorder %s798_s25, %s798_s25 }
  0x34   : > { %p607_p0 = scmp.lt.s32.totalorder %s605_s29, %s598_s22 }
  0x35   : > { %p601_p7 = pnand %p599_p5, %p559_p13 }
  0x36   : > { %p608_p1 = por %p607_p0, %p606_p12 }
  0x37   : > { %p602_p9 = pneg %p601_p7 }
  0x39   : > { %p609_p2 = pnand %p608_p1, %p602_p9 }
  0x3b   : > { %612 = shalt.err (!%p609_p2)
}
  0x3c   : > { %504 = dma.hbm_to_vmem [thread:$0]  (!%p794_p11), %s986_s2, 16, %s798_s25, [#allocation6]  }
  0x3d   : > { %s857_s5 = sadd.s32 1, %s713_s15   ;;  %s27_s23 = sadd.s32 1, %s709_s14 }
  0x3e   : > { %s24_s6 = ssub.s32 %s713_s15, %s857_s5  ;;  %p34_p13 = scmp.ne.s32.totalorder %s709_s14, %s705_s13 }
  0x3f   : > { %p25_p6 = scmp.eq.s32.totalorder %s24_s6, 0  ;;  %p35_p10 = scmp.eq.s32.totalorder %s713_s15, 0 }
  0x40   : > { %p995_p3 = scmp.eq.s32.totalorder %s764_s16, 1  ;;  %p515_p7 = scmp.lt.s32.totalorder %s713_s15, 2 }
  0x41   : > { %s873_s10 = scalar_select %p25_p6, %s709_s14, %s27_s23  }
  0x42   : > { %p867_p5 = por %p995_p3, %p34_p13  ;;  %p36_p9 = por %p35_p10, %p34_p13 }
  0x43   : > { %s156_s11 = sand.u32 1, %s709_s14   ;;  %s462_s25 = sshll.u32 %s713_s15, 9 }
  0x44   : > { %s996_s9 = scalar_select %p867_p5, 1, 0 }
  0x45   : > { %s444_s17 = sshll.u32 %s156_s11, 5  ;;  %s880_s26 = scalar_lea.hbm %s984_s0, %s462_s25 }
  0x46   : > { %s160_s27 = scalar_lea.vmem [#allocation2], %s444_s17  ;;  %p884_p11 = pnand %p515_p7, %p36_p9 }
  0x47   : > { %s167_s28 = sshll.u32 %s160_s27, 4  ;;  %s888_s29 = scalar_lea.sflag [#allocation3], %s156_s11  ;;  %s882_s28 = int_to_ptr.vmem [resolvable:$true] %s167_s28 }
  0x48   : > { %s613_s30 = scalar_lea.hbm %s880_s26, 512  ;;  %p615_p0 = pneg %p884_p11 }
  0x49   : > { %p614_p12 = scmp.ne.s32.totalorder %s880_s26, %s613_s30  ;;  %s618_s6 = scalar_lea.hbm %s984_s0, 1024 }
  0x4a   : > { %p619_p13 = scmp.lt.u32.totalorder %s880_s26, %s984_s0  ;;  %p620_p6 = scmp.lt.u32.totalorder %s618_s6, %s613_s30 }
  0x4b   : > { %p616_p1 = pnand %p615_p0, %p614_p12  ;;  %p622_p3 = scmp.lt.u32.totalorder %s613_s30, %s880_s26 }
  0x4c   : > { %p621_p10 = por %p620_p6, %p619_p13 }
  0x4d   : > { %p617_p2 = pneg %p616_p1 }
  0x4e   : > { %p623_p7 = por %p622_p3, %p621_p10 }
  0x50   : > { %p624_p9 = pnand %p623_p7, %p617_p2 }
  0x52   : > { %627 = shalt.err (!%p624_p9)
}
  0x53   : > { %s628_s11 = scalar_lea.vmem %s882_s28, 512  ;;  %s719_s21 = smov [#allocation2]  }
  0x54   : > { %p629_p12 = scmp.ne.s32.totalorder %s882_s28, %s628_s11  ;;  %s633_s24 = sshll.u32 %s719_s21, 4  ;;  %s634_s24 = int_to_ptr.vmem [resolvable:$false] %s633_s24 }
  0x55   : > { %s635_s27 = scalar_lea.vmem %s634_s24, 1024  ;;  %p636_p4 = scmp.lt.s32.totalorder %s882_s28, %s634_s24 }
  0x56   : > { %p631_p1 = pnand %p629_p12, %p615_p0  ;;  %p637_p13 = scmp.lt.s32.totalorder %s635_s27, %s628_s11 }
  0x58   : > { %p632_p5 = pneg %p631_p1  ;;  %p638_p6 = por %p637_p13, %p636_p4 }
  0x5a   : > { %p639_p10 = pnand %p638_p6, %p632_p5 }
  0x5c   : > { %642 = shalt.err (!%p639_p10)
}
  0x5d   : > { %508 = dma.hbm_to_vmem [thread:$0]  (!%p884_p11), %s880_s26, 512, %s882_s28, %s888_s29, %s717_s7, %s717_s7, %s718_s8  }
  0x5e   : > { %179 = sbr.rel (%p783_p8) target bundleno = 342 (0x156), region = 32  ;;  %s922_s30 = sand.u32 (!%p783_p8), 1, %s705_s13  }
  0x5f   : > { %s448_s4 = sshll.u32 (!%p783_p8), %s922_s30, 5  ;;  %s182_s23 = scalar_lea.sflag (!%p783_p8), [#allocation3], %s922_s30 }
  0x60   : > { %s185_s6 = scalar_lea.vmem (!%p783_p8), [#allocation2], %s448_s4  ;;  %p998_p4 = scmp.ne.s32.totalorder (!%p783_p8), %s991_s18, 0 }
  0x65   : > { %688 = dma.done.wait (%p998_p4), %s182_s23, 512  }
  0x66   : > { %690 = vsyncadd (%p998_p4), %s182_s23, 4294966784  ;;  %p999_p5 = scmp.eq.s32.totalorder %s764_s16, 0 }
  0x68   : > { %692 = dma.done.wait (%p999_p5), [#allocation6], 272   ;;  %p1000_p11 = pmov %p999_p5 }
  0x69   : > { %vm231_vm0 = vcmask 130048   ;;  %v222_v0 = vld [vmem:[#allocation5] sm:$0xff]  ;;  %v223_v1 = vld [vmem:[#allocation5 + $0x8] sm:$0xff]  ;;  %v220_v4 = vld [vmem:[%s185_s6 + $0x10] sm:$0xff]  ;;  %s215_s18 = scalar_lea.vmem [#allocation8], %s448_s4  ;;  %s463_s7 = sshll.u32 %s764_s16, 9 }
  0x6a   : > { %694 = vsyncadd (%p1000_p11), [#allocation6], 4294967024  ;;  %v218_v2 = vld [vmem:[%s185_s6] sm:$0xff]  ;;  %v480_v3 = vpack.c.bf16 %v223_v1, %v222_v0  ;;  %477 = vmatprep.mubr.msk.f32.mxu1 %vm231_vm0, %v220_v4  ;;  %v219_v5 = vld [vmem:[%s185_s6 + $0x8] sm:$0xff]  ;;  %s347_s20 = sshll.u32 %s215_s18, 4  ;;  %s940_s28 = scalar_lea.hbm %s987_s3, %s463_s7  ;;  %s935_s20 = int_to_ptr.vmem [resolvable:$true] %s347_s20 }
  0x6b   : > { %474 = vmatprep.mubr.msk.f32.mxu0 %vm231_vm0, %v218_v2  ;;  %v221_v6 = vld [vmem:[%s185_s6 + $0x18] sm:$0xff]  ;;  %v452_v7 = vld [vmem:[#allocation7] ss:$0 sm:$0xff]  ;;  %s334_s16 = scalar_lea.sflag [#allocation4], %s922_s30  ;;  %s643_s22 = scalar_lea.vmem %s935_s20, 512 }
  0x6c   : > { %481 = vmatprep.subr.bf16.mxu0 %v480_v3  ;;  %484 = vmatprep.subr.bf16.mxu1 %v480_v3  ;;  %p644_p8 = scmp.ne.s32.totalorder %s935_s20, %s643_s22  ;;  %p1001_p0 = scmp.ne.s32.totalorder %s996_s9, 0 }
  0x6d   : > { %483 = vmatpush3.bf16.msra.mxu0 %v480_v3  ;;  %485 = vmatpush3.bf16.msra.mxu1 %v480_v3  ;;  %s720_s29 = smov [#allocation8]  }
  0x6e   : > { %p645_p2 = pnand %p644_p8, %p1001_p0  ;;  %s647_s17 = sshll.u32 %s720_s29, 4  ;;  %s648_s17 = int_to_ptr.vmem [resolvable:$false] %s647_s17 }
  0x6f   : > { %s649_s25 = scalar_lea.vmem %s648_s17, 1024  ;;  %p650_p7 = scmp.lt.s32.totalorder %s935_s20, %s648_s17 }
  0x70   : > { %475 = vmatmul.mubr.msk.f32.vlgmr.msra.gmra.mrb[0].mxu0 %vm231_vm0, %v219_v5  ;;  %478 = vmatmul.mubr.msk.f32.vlgmr.msra.gmra.mrb[0].mxu1 %vm231_vm0, %v221_v6  ;;  %p646_p3 = pneg %p645_p2  ;;  %p651_p9 = scmp.lt.s32.totalorder %s649_s25, %s643_s22 }
  0x72   : > { %p652_p12 = por %p651_p9, %p650_p7 }
  0x74   : > { %p653_p1 = pnand %p652_p12, %p646_p3 }
 0x143   : > { %v476_v8 = vpop.f32.mrb[0].mxu0  ;;  %v479_v9 = vpop.f32.mrb[0].mxu1 }
 0x144   : > { %v316_v10 = vadd.f32 %v476_v8, %v452_v7  ;;  %v326_v11 = vadd.f32 %v479_v9, %v452_v7  ;;  %v310_v12 = vpop.f32.mrb[1].mxu0  ;;  %v320_v13 = vpop.f32.mrb[1].mxu1 }
 0x145   : > { %v311_v14 = vadd.f32 %v452_v7, %v310_v12  ;;  %v321_v15 = vadd.f32 %v452_v7, %v320_v13 }
 0x146   : > { %330 = vst [vmem:[%s215_s18 + $0x8] sm:$0xff] %v316_v10  ;;  %332 = vst [vmem:[%s215_s18 + $0x18] sm:$0xff] %v326_v11 }
 0x147   : > { %329 = vst [vmem:[%s215_s18] sm:$0xff] %v311_v14  ;;  %331 = vst [vmem:[%s215_s18 + $0x10] sm:$0xff] %v321_v15 }
 0x148   : > { %656 = shalt.err (!%p653_p1)
}
 0x149   : > { %s657_s11 = scalar_lea.hbm %s940_s28, 512  ;;  %s661_s27 = scalar_lea.hbm %s987_s3, 1024 }
 0x14a   : > { %p658_p13 = scmp.ne.s32.totalorder %s940_s28, %s657_s11  ;;  %p662_p4 = scmp.lt.u32.totalorder %s940_s28, %s987_s3 }
 0x14b   : > { %p663_p5 = scmp.lt.u32.totalorder %s661_s27, %s657_s11  ;;  %p665_p8 = scmp.lt.u32.totalorder %s657_s11, %s940_s28 }
 0x14c   : > { %p659_p6 = pnand %p658_p13, %p1001_p0 }
 0x14d   : > { %p664_p11 = por %p663_p5, %p662_p4 }
 0x14e   : > { %p660_p10 = pneg %p659_p6 }
 0x14f   : > { %p666_p2 = por %p665_p8, %p664_p11 }
 0x151   : > { %p667_p3 = pnand %p666_p2, %p660_p10 }
 0x153   : > { %670 = shalt.err (!%p667_p3)
}
 0x154   : > { %s721_s6 = smov 128   ;;  %s722_s18 = smov 8  }
 0x155   : > { %496 = dma.vmem_to_hbm [thread:$0]  (%p1001_p0), %s935_s20, 512, %s940_s28, %s334_s16, %s721_s6, %s721_s6, %s722_s18  }
 0x156 PF: > { %s362_s7 = sand.u32 1, %s701_s12   ;;  %p1002_p7 = scmp.ne.s32.totalorder %s992_s19, 0 }
 0x157   : > { %p1003_p9 = scmp.ge.s32.totalorder %s713_s15, 2  ;;  %s363_s8 = scalar_lea.sflag [#allocation4], %s362_s7 }
 0x159   : > { %p510_p12 = pnand %p1003_p9, %p1002_p7 }
 0x15b   : > { %696 = dma.done.wait (!%p510_p12), %s363_s8, 512  }
 0x15c   : > { %698 = vsyncadd (!%p510_p12), %s363_s8, 4294966784  ;;  %p17_p1 = scmp.ge.s32.totalorder %s857_s5, 4   ;;  %s1004_s12 = smov %s705_s13 }
 0x15d   : > { %s1005_s13 = smov %s709_s14  ;;  %s1006_s14 = smov %s873_s10 }
 0x15e   : > { %s1007_s15 = smov %s857_s5  ;;  %19 = sbr.rel (!%p17_p1) target bundleno = 6 (0x6), region = 85 }
 0x165   :  { %368 = vsyncpa [#allocation3], 1 }
 0x166   :  { %370 = vsyncpa [#allocation3 + $0x1], 1 }
 0x167   :  { %371 = vsyncpa [#allocation6], 1 }
 0x168   :  { %372 = vsyncpa [#allocation4], 1 }
 0x169   :  { %374 = vsyncpa [#allocation4 + $0x1], 1 }

// kernel: polynormer_forward.16
= control target key start
LH: loop header
LB: loop body
LE: loop exit
PB: predicated region body
PF: predicated region fallthrough
CT: control target
= control target key end

     0   :  { %s2256_s0 = inlined_call_operand.hbm [shape: bf16[64,64], index: 0, kind: input, shape index: {}]   ;;  %s2257_s1 = inlined_call_operand.hbm [shape: f32[64,128], index: 1, kind: input, shape index: {}, may-alias: {1,2}]   ;;  %s2258_s2 = inlined_call_operand.hbm [shape: f32[64,128], index: 2, kind: input, shape index: {}, may-alias: {1,2}]   ;;  %s2259_s3 = inlined_call_operand.hbm [shape: f32[1,32], index: 3, kind: input, shape index: {}]   ;;  %s2260_s4 = inlined_call_operand.hbm [shape: f32[1,32], index: 4, kind: input, shape index: {}]   ;;  %s2261_s5 = inlined_call_operand.hbm [shape: f32[1,32], index: 5, kind: input, shape index: {}]   ;;  %s2262_s6 = inlined_call_operand.hbm [shape: f32[1,32], index: 6, kind: input, shape index: {}]   ;;  %s2263_s7 = inlined_call_operand.hbm [shape: f32[64,32], index: 7, kind: input, shape index: {}, may-alias: {7,9}]   ;;  %s2264_s8 = inlined_call_operand.hbm [shape: f32[64,32], index: 8, kind: output, shape index: {0}]   ;;  %s2265_s9 = inlined_call_operand.hbm [shape: f32[64,32], index: 9, kind: output, shape index: {1}, may-alias: {7,9}]  }
   0x1   :  { %2292 = sst [smem:[#allocation34_spill]] %s2256_s0 }
   0x2   :  { %2293 = sst [smem:[#allocation35_spill]] %s2264_s8 }
   0x3   :  { %2294 = sst [smem:[#allocation36_spill]] %s2265_s9 }
   0x4   :  { %15 = vsyncpa [#allocation3], 0 }
   0x5   :  { %17 = vsyncpa [#allocation3 + $0x1], 0 }
   0x6   :  { %18 = vsyncpa [#allocation6], 0 }
   0x7   :  { %19 = vsyncpa [#allocation10], 0 }
   0x8   :  { %20 = vsyncpa [#allocation13], 0 }
   0x9   :  { %21 = vsyncpa [#allocation4], 0 }
   0xa   :  { %23 = vsyncpa [#allocation4 + $0x1], 0 }
   0xb   :  { %24 = vsyncpa [#allocation17], 0 }
   0xc   :  { %26 = vsyncpa [#allocation17 + $0x1], 0  ;;  %s1720_s30 = smov 0   ;;  %s1722_s10 = smov 0  }
   0xd   :  { %s1724_s11 = smov 0   ;;  %s1726_s12 = smov 0  }
   0xe LB: > { %2295 = sst [smem:[#allocation27_spill]] %s1638_s30  ;;  %s1741_s13 = sadd.s32 4294967295, %s1650_s12   ;;  %s1650_s12 = sphi %s1726_s12, %s2340_s12   ;;  %s1646_s11 = sphi %s1724_s11, %s2342_s11   ;;  %s1642_s10 = sphi %s1722_s10, %s2344_s10   ;;  %s1638_s30 = sphi %s1720_s30, %s2343_s30  }
   0xf   : > { %2296 = sst [smem:[#allocation28_spill]] %s1646_s11  ;;  %s1034_s14 = sadd.s32 4294967294, %s1650_s12  }
  0x10   : > { %s1745_s15 = sadd.s32 1, %s1650_s12   ;;  %s39_s16 = sadd.s32 1, %s1646_s11 }
  0x11   : > { %2297 = sst [smem:[#allocation29_spill]] %s1745_s15  ;;  %s36_s17 = ssub.s32 %s1650_s12, %s1745_s15 }
  0x12   : > { %p46_p0 = scmp.ne.s32.totalorder %s1646_s11, %s1642_s10  ;;  %p37_p1 = scmp.eq.s32.totalorder %s36_s17, 0 }
  0x13   : > { %p47_p2 = scmp.eq.s32.totalorder %s1650_s12, 0  ;;  %p2267_p3 = scmp.ne.s32.totalorder %s1642_s10, %s1638_s30 }
  0x14   : > { %p233_p4 = scmp.eq.s32.totalorder %s1741_s13, 1  ;;  %p239_p7 = scmp.eq.s32.totalorder %s1034_s14, 1 }
  0x15   : > { %s1757_s18 = scalar_select %p37_p1, %s1646_s11, %s39_s16  }
  0x16   : > { %p1759_p5 = por %p47_p2, %p46_p0  ;;  %p1763_p6 = por %p233_p4, %p46_p0 }
  0x17   : > { %2298 = sst [smem:[#allocation30_spill]] %s1757_s18  ;;  %p1218_p9 = scmp.lt.s32.totalorder %s1650_s12, 2 }
  0x18   : > { %s2300_s20 = scalar_select %p1763_p6, 1, 0 }
  0x19   : > { %p1772_p10 = por %p239_p7, %p2267_p3  ;;  %s342_s22 = sand.u32 1, %s1650_s12  }
  0x1a   : > { %2301 = sst [smem:[#allocation31_spill]] %s2300_s20  ;;  %s2266_s23 = sand.u32 1, %s1646_s11  }
  0x1b   : > { %s2302_s21 = scalar_select %p1772_p10, 1, 0 }
  0x1c   : > { %s1042_s24 = sshll.u32 %s2266_s23, 4  ;;  %s1078_s25 = sshll.u32 %s1650_s12, 8 }
  0x1d   : > { %2303 = sst [smem:[#allocation32_spill]] %s2302_s21  ;;  %s346_s29 = scalar_lea.vmem [#allocation2], %s1042_s24 }
  0x1e   : > { %s2304_s0 = sld [smem:[#allocation34_spill]]  ;;  %s353_s14 = sshll.u32 %s346_s29, 4  ;;  %s1792_s14 = int_to_ptr.vmem [resolvable:$true] %s353_s14 }
  0x1f   : > { %p1788_p11 = pnand %p1218_p9, %p1759_p5  ;;  %s1794_s17 = scalar_lea.sflag [#allocation3], %s342_s22 }
  0x21   : > { %s2305_s16 = scalar_select %p1788_p11, 1, 0 }
  0x22   : > { %p1800_p13 = pneg %p1788_p11 }
  0x24   : > { %s1784_s28 = scalar_lea.hbm %s2304_s0, %s1078_s25  ;;  %s1303_s26 = scalar_lea.hbm %s2304_s0, 512 }
  0x25   : > { %s1298_s23 = scalar_lea.hbm %s1784_s28, 256  ;;  %p1304_p2 = scmp.lt.u32.totalorder %s1784_s28, %s2304_s0 }
  0x26   : > { %p1299_p12 = scmp.ne.s32.totalorder %s1784_s28, %s1298_s23  ;;  %p1305_p4 = scmp.lt.u32.totalorder %s1303_s26, %s1298_s23 }
  0x27   : > { %s2306_s25 = scalar_select %p1800_p13, 1, 0 }
  0x28   : > { %p1301_p0 = pnand %p1800_p13, %p1299_p12  ;;  %p1306_p5 = por %p1305_p4, %p1304_p2 }
  0x29   : > { %p1307_p7 = scmp.lt.u32.totalorder %s1298_s23, %s1784_s28 }
  0x2a   : > { %p1302_p1 = pneg %p1301_p0 }
  0x2b   : > { %p1308_p9 = por %p1307_p7, %p1306_p5 }
  0x2d   : > { %p1309_p8 = pnand %p1308_p9, %p1302_p1 }
  0x2f   : > { %1312 = shalt.err (!%p1309_p8)
}
  0x30   : > { %s1313_s22 = scalar_lea.vmem %s1792_s14, 256  ;;  %s1652_s19 = smov [#allocation2]  }
  0x31   : > { %p1314_p12 = scmp.ne.s32.totalorder %s1792_s14, %s1313_s22  ;;  %s1318_s24 = sshll.u32 %s1652_s19, 4  ;;  %s1319_s24 = int_to_ptr.vmem [resolvable:$false] %s1318_s24 }
  0x32   : > { %s1320_s27 = scalar_lea.vmem %s1319_s24, 512  ;;  %p1321_p10 = scmp.lt.s32.totalorder %s1792_s14, %s1319_s24 }
  0x33   : > { %p1316_p0 = pnand %p1314_p12, %p1800_p13  ;;  %p1322_p6 = scmp.lt.s32.totalorder %s1320_s27, %s1313_s22 }
  0x35   : > { %p1317_p3 = pneg %p1316_p0  ;;  %p1323_p2 = por %p1322_p6, %p1321_p10 }
  0x37   : > { %p1324_p4 = pnand %p1323_p2, %p1317_p3 }
  0x39   : > { %1327 = shalt.err (!%p1324_p4)
}
  0x3a   : > { %s1653_s23 = smov 64   ;;  %s1654_s26 = smov 4  }
  0x3b   : > { %1199 = dma.hbm_to_vmem [thread:$0]  (!%p1788_p11), %s1784_s28, 256, %s1792_s14, %s1794_s17, %s1653_s23, %s1653_s23, %s1654_s26  }
  0x3c   : > { %s2307_s29 = sand.u32 1, %s1646_s11   ;;  %p2275_p3 = scmp.eq.s32.totalorder %s1741_s13, 0 }
  0x3d   : > { %s1826_s22 = sshll.u32 %s2307_s29, 5  ;;  %p1035_p6 = scmp.ge.s32.totalorder %s1650_s12, 1 }
  0x3e   : > { %p272_p8 = scmp.lt.s32.totalorder %s1650_s12, 3  ;;  %p2308_p10 = scmp.ne.s32.totalorder %s1642_s10, %s1638_s30 }
  0x3f   : > { %s1655_s27 = smov [#allocation5]   ;;  %s1656_s23 = smov [#allocation9]  }
  0x40   : > { %p1836_p1 = por %p2275_p3, %p2308_p10  ;;  %p1840_p5 = pnand %p1035_p6, %p272_p8 }
  0x41   : > { %s284_s28 = sshll.u32 %s1655_s27, 4  ;;  %s309_s26 = sshll.u32 %s1656_s23, 4  ;;  %s1844_s28 = int_to_ptr.vmem [resolvable:$true] %s284_s28  ;;  %s1854_s26 = int_to_ptr.vmem [resolvable:$true] %s309_s26 }
  0x42   : > { %s2309_s19 = scalar_select %p1836_p1, 1, 0 }
  0x43   : > { %s2311_s24 = scalar_select %p1840_p5, 1, 0 }
  0x44   : > { %2310 = sst [smem:[#allocation33_spill]] %s2309_s19  ;;  %p1180_p7 = pneg %p1840_p5 }
  0x45   : > { %s2278_s29 = sshll.u32 %s1650_s12, 9  ;;  %s1328_s21 = scalar_lea.hbm %s2257_s1, 1024 }
  0x46   : > { %p1850_p9 = pnand %p1180_p7, %p2275_p3  ;;  %s1862_s27 = scalar_lea.hbm %s2258_s2, %s2278_s29 }
  0x47   : > { %p1329_p12 = scmp.ne.s32.totalorder %s2257_s1, %s1328_s21  ;;  %p1335_p6 = scmp.lt.u32.totalorder %s1328_s21, %s2257_s1 }
  0x48   : > { %s2312_s14 = scalar_select %p1850_p9, 1, 0 }
  0x49   : > { %p1872_p0 = pneg %p1850_p9 }
  0x4b   : > { %s2313_s23 = scalar_select %p1872_p0, 1, 0 }
  0x4c   : > { %p1331_p2 = pnand %p1872_p0, %p1329_p12 }
  0x4e   : > { %p1332_p4 = pneg %p1331_p2 }
  0x50   : > { %p1337_p8 = pnand %p1335_p6, %p1332_p4 }
  0x52   : > { %1340 = shalt.err (!%p1337_p8)
}
  0x53   : > { %s1341_s9 = scalar_lea.vmem %s1844_s28, 1024  ;;  %p1349_p1 = scmp.lt.s32.totalorder %s1844_s28, %s1844_s28 }
  0x54   : > { %p1342_p10 = scmp.ne.s32.totalorder %s1844_s28, %s1341_s9  ;;  %p1350_p5 = scmp.lt.s32.totalorder %s1341_s9, %s1341_s9 }
  0x56   : > { %p1344_p7 = pnand %p1342_p10, %p1872_p0  ;;  %p1351_p12 = por %p1350_p5, %p1349_p1 }
  0x58   : > { %p1345_p3 = pneg %p1344_p7 }
  0x5a   : > { %p1352_p2 = pnand %p1351_p12, %p1345_p3 }
  0x5c   : > { %1355 = shalt.err (!%p1352_p2)
}
  0x5d   : > { %s2289_s30 = smov 128   ;;  %s1658_s11 = smov 8  }
  0x5e   : > { %1183 = dma.hbm_to_vmem [thread:$0]  (!%p1850_p9), %s2257_s1, 1024, %s1844_s28, [#allocation6], %s2289_s30, %s2289_s30, %s1658_s11  }
  0x5f   : > { %s1356_s9 = scalar_lea.hbm %s2260_s4, 16 }
  0x60   : > { %p1357_p3 = scmp.ne.s32.totalorder %s2260_s4, %s1356_s9  ;;  %p1363_p4 = scmp.lt.u32.totalorder %s1356_s9, %s2260_s4 }
  0x62   : > { %p1359_p1 = pnand %p1357_p3, %p1872_p0 }
  0x64   : > { %p1360_p5 = pneg %p1359_p1 }
  0x66   : > { %p1365_p6 = pnand %p1363_p4, %p1360_p5 }
  0x68   : > { %1368 = shalt.err (!%p1365_p6)
}
  0x69   : > { %s1369_s28 = scalar_lea.vmem %s1854_s26, 16  ;;  %s1376_s8 = scalar_lea.vmem %s1854_s26, 32 }
  0x6a   : > { %p1370_p8 = scmp.ne.s32.totalorder %s1854_s26, %s1369_s28  ;;  %p1377_p12 = scmp.lt.s32.totalorder %s1854_s26, %s1854_s26 }
  0x6b   : > { %p1378_p2 = scmp.lt.s32.totalorder %s1376_s8, %s1369_s28 }
  0x6c   : > { %p1372_p10 = pnand %p1370_p8, %p1872_p0 }
  0x6d   : > { %p1379_p3 = por %p1378_p2, %p1377_p12 }
  0x6e   : > { %p1373_p7 = pneg %p1372_p10 }
  0x70   : > { %p1380_p1 = pnand %p1379_p3, %p1373_p7 }
  0x72   : > { %1383 = shalt.err (!%p1380_p1)
}
  0x73   : > { %1189 = dma.hbm_to_vmem [thread:$0]  (!%p1850_p9), %s2260_s4, 16, %s1854_s26, [#allocation10]  }
  0x74   : > { %s367_s29 = scalar_lea.vmem [#allocation7], %s1826_s22  ;;  %s1659_s21 = smov [#allocation8]  }
  0x75   : > { %s374_s15 = sshll.u32 %s367_s29, 4  ;;  %s1923_s0 = sshll.u32 %s1659_s21, 4  ;;  %s1921_s15 = int_to_ptr.vmem [resolvable:$true] %s374_s15  ;;  %s299_s0 = int_to_ptr.vmem [resolvable:$true] %s1923_s0 }
  0x76   : > { %s1384_s18 = scalar_lea.hbm %s1862_s27, 512  ;;  %s1389_s8 = scalar_lea.hbm %s2258_s2, 1024 }
  0x77   : > { %p1385_p5 = scmp.ne.s32.totalorder %s1862_s27, %s1384_s18  ;;  %p1390_p8 = scmp.lt.u32.totalorder %s1862_s27, %s2258_s2 }
  0x78   : > { %p1391_p10 = scmp.lt.u32.totalorder %s1389_s8, %s1384_s18  ;;  %p1393_p12 = scmp.lt.u32.totalorder %s1384_s18, %s1862_s27 }
  0x79   : > { %p1387_p4 = pnand %p1385_p5, %p1800_p13 }
  0x7a   : > { %p1392_p7 = por %p1391_p10, %p1390_p8 }
  0x7b   : > { %p1388_p6 = pneg %p1387_p4 }
  0x7c   : > { %p1394_p2 = por %p1393_p12, %p1392_p7 }
  0x7e   : > { %p1395_p3 = pnand %p1394_p2, %p1388_p6 }
  0x80   : > { %1398 = shalt.err (!%p1395_p3)
}
  0x81   : > { %s1399_s26 = scalar_lea.vmem %s1921_s15, 512  ;;  %s1660_s29 = smov [#allocation7]  }
  0x82   : > { %p1400_p1 = scmp.ne.s32.totalorder %s1921_s15, %s1399_s26  ;;  %s1404_s21 = sshll.u32 %s1660_s29, 4  ;;  %s1405_s21 = int_to_ptr.vmem [resolvable:$false] %s1404_s21 }
  0x83   : > { %s1406_s9 = scalar_lea.vmem %s1405_s21, 1024  ;;  %p1407_p9 = scmp.lt.s32.totalorder %s1921_s15, %s1405_s21 }
  0x84   : > { %p1402_p5 = pnand %p1400_p1, %p1800_p13  ;;  %p1408_p0 = scmp.lt.s32.totalorder %s1406_s9, %s1399_s26 }
  0x86   : > { %p1403_p4 = pneg %p1402_p5  ;;  %p1409_p8 = por %p1408_p0, %p1407_p9 }
  0x88   : > { %p1410_p10 = pnand %p1409_p8, %p1403_p4 }
  0x8a   : > { %1413 = shalt.err (!%p1410_p10)
}
  0x8b   : > { %1202 = dma.hbm_to_vmem [thread:$0]  (!%p1788_p11), %s1862_s27, 512, %s1921_s15, %s1794_s17, %s2289_s30, %s2289_s30, %s1658_s11  }
  0x8c   : > { %s1414_s8 = scalar_lea.hbm %s2259_s3, 16  ;;  %p2314_p0 = scmp.ne.s32.totalorder %s2313_s23, 0 }
  0x8d   : > { %p1415_p9 = scmp.ne.s32.totalorder %s2259_s3, %s1414_s8  ;;  %p1421_p12 = scmp.lt.u32.totalorder %s1414_s8, %s2259_s3 }
  0x8f   : > { %p1417_p6 = pnand %p1415_p9, %p2314_p0 }
  0x91   : > { %p1418_p7 = pneg %p1417_p6 }
  0x93   : > { %p1423_p2 = pnand %p1421_p12, %p1418_p7 }
  0x95   : > { %1426 = shalt.err (!%p1423_p2)
}
  0x96   : > { %s1427_s21 = scalar_lea.vmem %s299_s0, 16  ;;  %s1434_s27 = scalar_lea.vmem %s299_s0, 32 }
  0x97   : > { %p1428_p3 = scmp.ne.s32.totalorder %s299_s0, %s1427_s21  ;;  %p1435_p4 = scmp.lt.s32.totalorder %s299_s0, %s299_s0 }
  0x98   : > { %p1436_p8 = scmp.lt.s32.totalorder %s1434_s27, %s1427_s21 }
  0x99   : > { %p1430_p1 = pnand %p1428_p3, %p2314_p0 }
  0x9a   : > { %p1437_p10 = por %p1436_p8, %p1435_p4 }
  0x9b   : > { %p1431_p5 = pneg %p1430_p1 }
  0x9d   : > { %p1438_p11 = pnand %p1437_p10, %p1431_p5 }
  0x9f   : > { %1441 = shalt.err (!%p1438_p11)
}
  0xa0   : > { %p2315_p9 = scmp.ne.s32.totalorder %s2312_s14, 0  ;;  %s1661_s18 = smov [#allocation11]  }
  0xa1   : > { %s320_s28 = sshll.u32 %s1661_s18, 4  ;;  %s1662_s8 = smov [#allocation12]   ;;  %s321_s28 = int_to_ptr.vmem [resolvable:$true] %s320_s28 }
  0xa2   : > { %1186 = dma.hbm_to_vmem [thread:$0]  (!%p2315_p9), %s2259_s3, 16, %s299_s0, [#allocation6]  }
  0xa3   : > { %s331_s20 = sshll.u32 %s1662_s8, 4  ;;  %s1442_s29 = scalar_lea.hbm %s2261_s5, 16  ;;  %s332_s20 = int_to_ptr.vmem [resolvable:$true] %s331_s20 }
  0xa4   : > { %p1443_p11 = scmp.ne.s32.totalorder %s2261_s5, %s1442_s29  ;;  %p1449_p12 = scmp.lt.u32.totalorder %s1442_s29, %s2261_s5 }
  0xa6   : > { %p1445_p6 = pnand %p1443_p11, %p2314_p0 }
  0xa8   : > { %p1446_p7 = pneg %p1445_p6 }
  0xaa   : > { %p1451_p2 = pnand %p1449_p12, %p1446_p7 }
  0xac   : > { %1454 = shalt.err (!%p1451_p2)
}
  0xad   : > { %s1455_s0 = scalar_lea.vmem %s321_s28, 16  ;;  %s1462_s9 = scalar_lea.vmem %s321_s28, 32 }
  0xae   : > { %p1456_p3 = scmp.ne.s32.totalorder %s321_s28, %s1455_s0  ;;  %p1463_p4 = scmp.lt.s32.totalorder %s321_s28, %s321_s28 }
  0xaf   : > { %p1464_p8 = scmp.lt.s32.totalorder %s1462_s9, %s1455_s0 }
  0xb0   : > { %p1458_p1 = pnand %p1456_p3, %p2314_p0 }
  0xb1   : > { %p1465_p10 = por %p1464_p8, %p1463_p4 }
  0xb2   : > { %p1459_p5 = pneg %p1458_p1 }
  0xb4   : > { %p1466_p13 = pnand %p1465_p10, %p1459_p5 }
  0xb6   : > { %1469 = shalt.err (!%p1466_p13)
}
  0xb7   : > { %1192 = dma.hbm_to_vmem [thread:$0]  (!%p2315_p9), %s2261_s5, 16, %s321_s28, [#allocation10]  }
  0xb8   : > { %s1470_s26 = scalar_lea.hbm %s2262_s6, 16 }
  0xb9   : > { %p1471_p11 = scmp.ne.s32.totalorder %s2262_s6, %s1470_s26  ;;  %p1477_p13 = scmp.lt.u32.totalorder %s1470_s26, %s2262_s6 }
  0xbb   : > { %p1473_p6 = pnand %p1471_p11, %p2314_p0 }
  0xbd   : > { %p1474_p7 = pneg %p1473_p6 }
  0xbf   : > { %p1479_p12 = pnand %p1477_p13, %p1474_p7 }
  0xc1   : > { %1482 = shalt.err (!%p1479_p12)
}
  0xc2   : > { %s1483_s0 = scalar_lea.vmem %s332_s20, 16  ;;  %s1490_s28 = scalar_lea.vmem %s332_s20, 32 }
  0xc3   : > { %p1484_p2 = scmp.ne.s32.totalorder %s332_s20, %s1483_s0  ;;  %p1491_p5 = scmp.lt.s32.totalorder %s332_s20, %s332_s20 }
  0xc4   : > { %p1492_p4 = scmp.lt.s32.totalorder %s1490_s28, %s1483_s0 }
  0xc5   : > { %p1486_p3 = pnand %p1484_p2, %p2314_p0 }
  0xc6   : > { %p1493_p8 = por %p1492_p4, %p1491_p5 }
  0xc7   : > { %p1487_p1 = pneg %p1486_p3 }
  0xc9   : > { %p1494_p10 = pnand %p1493_p8, %p1487_p1 }
  0xcb   : > { %1497 = shalt.err (!%p1494_p10)
}
  0xcc   : > { %1195 = dma.hbm_to_vmem [thread:$0]  (!%p2315_p9), %s2262_s6, 16, %s332_s20, [#allocation13]  }
  0xcd   : > { %s2316_s8 = sshll.u32 %s1650_s12, 9  ;;  %s388_s26 = scalar_lea.vmem [#allocation14], %s1826_s22 }
  0xce   : > { %s2010_s19 = scalar_lea.hbm %s2263_s7, %s2316_s8  ;;  %s395_s29 = sshll.u32 %s388_s26, 4  ;;  %s2013_s29 = int_to_ptr.vmem [resolvable:$true] %s395_s29 }
  0xcf   : > { %s1498_s14 = scalar_lea.hbm %s2010_s19, 512  ;;  %p2317_p11 = scmp.ne.s32.totalorder %s2306_s25, 0 }
  0xd0   : > { %p1499_p0 = scmp.ne.s32.totalorder %s2010_s19, %s1498_s14  ;;  %s1503_s27 = scalar_lea.hbm %s2263_s7, 1024 }
  0xd1   : > { %p1504_p9 = scmp.lt.u32.totalorder %s2010_s19, %s2263_s7  ;;  %p1505_p13 = scmp.lt.u32.totalorder %s1503_s27, %s1498_s14 }
  0xd2   : > { %p1501_p6 = pnand %p1499_p0, %p2317_p11  ;;  %p1507_p2 = scmp.lt.u32.totalorder %s1498_s14, %s2010_s19 }
  0xd3   : > { %p1506_p12 = por %p1505_p13, %p1504_p9 }
  0xd4   : > { %p1502_p7 = pneg %p1501_p6 }
  0xd5   : > { %p1508_p3 = por %p1507_p2, %p1506_p12 }
  0xd7   : > { %p1509_p1 = pnand %p1508_p3, %p1502_p7 }
  0xd9   : > { %1512 = shalt.err (!%p1509_p1)
}
  0xda   : > { %s1513_s22 = scalar_lea.vmem %s2013_s29, 512  ;;  %s1663_s28 = smov [#allocation14]  }
  0xdb   : > { %p1514_p5 = scmp.ne.s32.totalorder %s2013_s29, %s1513_s22  ;;  %s1518_s9 = sshll.u32 %s1663_s28, 4  ;;  %s1519_s9 = int_to_ptr.vmem [resolvable:$false] %s1518_s9 }
  0xdc   : > { %s1520_s18 = scalar_lea.vmem %s1519_s9, 1024  ;;  %p1521_p10 = scmp.lt.s32.totalorder %s2013_s29, %s1519_s9 }
  0xdd   : > { %p1516_p4 = pnand %p1514_p5, %p2317_p11  ;;  %p1522_p0 = scmp.lt.s32.totalorder %s1520_s18, %s1513_s22 }
  0xdf   : > { %p1517_p8 = pneg %p1516_p4  ;;  %p1523_p6 = por %p1522_p0, %p1521_p10 }
  0xe1   : > { %p1524_p9 = pnand %p1523_p6, %p1517_p8 }
  0xe3   : > { %1527 = shalt.err (!%p1524_p9)
}
  0xe4   : > { %p2318_p7 = scmp.ne.s32.totalorder %s2305_s16, 0  ;;  %s2319_s8 = smov 128  }
  0xe5   : > { %p2320_p11 = scmp.ne.s32.totalorder %s2311_s24, 0 }
  0xe6   : > { %1205 = dma.hbm_to_vmem [thread:$0]  (!%p2318_p7), %s2010_s19, 512, %s2013_s29, %s1794_s17, %s2319_s8, %s2319_s8, %s1658_s11  }
  0xe7   : > { %407 = sbr.rel (%p2320_p11) target bundleno = 979 (0x3d3), region = 52  ;;  %s2321_s25 = sld [smem:[#allocation33_spill]] (!%p2320_p11) }
  0xe8   : > { %s409_s30 = sand.u32 (!%p2320_p11), 1, %s1741_s13   ;;  %s2044_s23 = sand.u32 (!%p2320_p11), 1, %s1642_s10  }
  0xe9   : > { %s1052_s26 = sshll.u32 (!%p2320_p11), %s2044_s23, 4  ;;  %s410_s14 = scalar_lea.sflag (!%p2320_p11), [#allocation3], %s409_s30 }
  0xea   : > { %s2047_s16 = scalar_lea.vmem (!%p2320_p11), [#allocation2], %s1052_s26 }
  0xed   : > { %p2322_p13 = scmp.ne.s32.totalorder (!%p2320_p11), %s2321_s25, 0 }
  0xef   : > { %1601 = dma.done.wait (%p2322_p13), %s410_s14, 256  }
  0xf0   : > { %1603 = vsyncadd (%p2322_p13), %s410_s14, 4294967040  ;;  %p2323_p12 = scmp.eq.s32.totalorder %s1741_s13, 0 }
  0xf2   : > { %1605 = dma.done.wait (%p2323_p12), [#allocation6], 1024   ;;  %p2324_p2 = pmov %p2323_p12 }
  0xf3   : > { %s2058_s17 = sshll.u32 %s2044_s23, 5 }
  0xf4   : > { %1607 = vsyncadd (%p2324_p2), [#allocation6], 4294966272  ;;  %s2061_s24 = scalar_lea.vmem [#allocation7], %s2058_s17 }
  0xf5   : > { %1609 = dma.done.wait (%p2322_p13), %s410_s14, 512  }
  0xf6   : > { %1611 = vsyncadd (%p2322_p13), %s410_s14, 4294966784  ;;  %p2325_p3 = pmov %p2324_p2 }
  0xf7   : > { %p2326_p1 = pmov %p2324_p2 }
  0xf8   : > { %1613 = dma.done.wait (%p2325_p3), [#allocation6], 16  }
  0xf9   : > { %1615 = vsyncadd (%p2326_p1), [#allocation6], 4294967280  ;;  %p2327_p5 = pmov %p2326_p1 }
  0xfa   : > { %p2328_p4 = pmov %p2326_p1 }
  0xfb   : > { %1617 = dma.done.wait (%p2327_p5), [#allocation10], 32  }
  0xfc   : > { %1619 = vsyncadd (%p2328_p4), [#allocation10], 4294967264  ;;  %p2329_p8 = pmov %p2326_p1 }
  0xfd   : > { %p2330_p10 = pmov %p2326_p1 }
  0xfe   : > { %1621 = dma.done.wait (%p2329_p8), [#allocation13], 16  }
  0xff   : > { %1623 = vsyncadd (%p2330_p10), [#allocation13], 4294967280  ;;  %s2080_s11 = scalar_lea.vmem [#allocation14], %s2058_s17 }
 0x100   : > { %1625 = dma.done.wait (%p2322_p13), %s410_s14, 512  }
 0x101   : > { %1627 = vsyncadd (%p2322_p13), %s410_s14, 4294966784  ;;  %v514_v0 = vld [vmem:[#allocation5] sm:$0xff]  ;;  %v515_v1 = vld [vmem:[#allocation5 + $0x8] sm:$0xff]  ;;  %s1664_s19 = smov 96   ;;  %vm578_vm0 = vcmask 523264   ;;  %s1665_s29 = smov 64  }
 0x102   : > { %v516_v2 = vld [vmem:[#allocation5 + $0x10] sm:$0xff]  ;;  %v1270_v3 = vpack.i.bf16 %v515_v1, %v514_v0  ;;  %v517_v4 = vld [vmem:[#allocation5 + $0x18] sm:$0xff]  ;;  %v518_v5 = vld [vmem:[#allocation5 + $0x20] sm:$0xff]  ;;  %vm706_vm1 = vcmask 261120   ;;  %s493_s20 = scalar_lea.vmem [#allocation15], %s2058_s17  ;;  %s1081_s21 = sshll.u32 %s1741_s13, 9 }
 0x103   : > { %v519_v6 = vld [vmem:[#allocation5 + $0x28] sm:$0xff]  ;;  %v520_v8 = vld [vmem:[#allocation5 + $0x30] sm:$0xff]  ;;  %v521_v9 = vld [vmem:[#allocation5 + $0x38] sm:$0xff]  ;;  %v1275_v10 = vpack.i.bf16 %v517_v4, %v516_v2  ;;  %s2154_s27 = scalar_lea.vmem [#allocation16], %s2058_s17  ;;  %s825_s15 = sshll.u32 %s493_s20, 4  ;;  %s2169_s15 = int_to_ptr.vmem [resolvable:$true] %s825_s15 }
 0x104   : > { %v1280_v7 = vpack.i.bf16 %v519_v6, %v518_v5  ;;  %1271 = vrot.lane.b32.xlu0 %v1270_v3, %s1664_s19  ;;  %v1285_v11 = vpack.i.bf16 %v521_v9, %v520_v8  ;;  %v1084_v12 = vld [vmem:[%s2047_s16] sm:$0xff]   ;;  %v1091_v14 = vld [vmem:[%s2047_s16 + $0x8] sm:$0xff]   ;;  %s2331_s0 = sld [smem:[#allocation31_spill]]  ;;  %s2332_s28 = sld [smem:[#allocation35_spill]] }
 0x105   : > { %v1085_v13 = vunpack.c.l.bf16 %v1084_v12  ;;  %v1089_v15 = vunpack.c.l.bf16 %v1091_v14  ;;  %v2090_v16 = vld [vmem:[%s2061_s24 + $0x8] sm:$0xff]  ;;  %v2093_v17 = vld [vmem:[%s2061_s24] sm:$0xff]  ;;  %v2099_v18 = vld [vmem:[%s2061_s24 + $0x10] sm:$0xff]  ;;  %v1086_v36 = vunpack.c.h.bf16 %v1084_v12  ;;  %v1090_v37 = vunpack.c.h.bf16 %v1091_v14  ;;  %s841_s18 = sshll.u32 %s2154_s27, 4  ;;  %s2333_s30 = sld [smem:[#allocation36_spill]]  ;;  %s2180_s18 = int_to_ptr.vmem [resolvable:$true] %s841_s18 }
 0x106   : > { %1281 = vrot.lane.b32.xlu1 %v1280_v7, %s1664_s19  ;;  %v2102_v19 = vld [vmem:[%s2061_s24 + $0x18] sm:$0xff]  ;;  %v1066_v43 = vld [vmem:[#allocation8] ss:$0 sm:$0xff]  ;;  %v1067_v49 = vld [vmem:[#allocation9] ss:$0 sm:$0xff]  ;;  %v511_v56 = vmax.f32 %v2090_v16, 0.0 }
 0x107   : > { %1120 = vmatprep.mubr.msk.f32.mxu0 %vm578_vm0, %v1085_v13  ;;  %1123 = vmatprep.mubr.msk.f32.mxu1 %vm578_vm0, %v1089_v15  ;;  %v513_v57 = vmax.f32 %v2102_v19, 0.0  ;;  %v510_v60 = vmax.f32 %v2093_v17, 0.0  ;;  %v512_v61 = vmax.f32 %v2099_v18, 0.0  ;;  %s807_s16 = scalar_lea.sflag [#allocation4], %s2044_s23  ;;  %s1528_s17 = scalar_lea.vmem %s2169_s15, 512 }
 0x108   : > { %1276 = vrot.lane.b32.xlu0 %v1275_v10, %s1664_s19  ;;  %p1529_p0 = scmp.ne.s32.totalorder %s2169_s15, %s1528_s17  ;;  %s1666_s24 = smov [#allocation15]  }
 0x10a   : > { %1286 = vrot.lane.b32.xlu1 %v1285_v11, %s1664_s19  ;;  %s2166_s9 = scalar_lea.hbm %s2332_s28, %s1081_s21  ;;  %p2335_p6 = scmp.ne.s32.totalorder %s2331_s0, 0 }
 0x10b   : > { %s2334_s26 = smov %s2333_s30  ;;  %s2178_s14 = scalar_lea.hbm %s2333_s30, %s1081_s21 }
 0x10c   : > { %566 = vrot.lane.b32.xlu0 %v2093_v17, %s1665_s29  ;;  %p1530_p9 = pnand %p1529_p0, %p2335_p6 }
 0x10e   : > { %568 = vrot.lane.b32.xlu1 %v2090_v16, %s1665_s29  ;;  %p1531_p7 = pneg %p1530_p9 }
 0x110   : > { %570 = vrot.lane.b32.xlu0 %v2099_v18, %s1665_s29 }
 0x112   : > { %572 = vrot.lane.b32.xlu1 %v2102_v19, %s1665_s29 }
 0x176   : > { %v1272_v20 = vpop.permute.xlu0 %1271 }
 0x177   : > { %v1274_v21 = vunpack.i.h.bf16 %v1272_v20  ;;  %v1273_v22 = vunpack.i.l.bf16 %v1272_v20 }
 0x178   : > { %v1282_v23 = vpop.permute.xlu1 %1281 }
 0x179   : > { %v1126_v24 = vpack.c.bf16 %v1274_v21, %v1273_v22  ;;  %v1284_v25 = vunpack.i.h.bf16 %v1282_v23  ;;  %v1283_v26 = vunpack.i.l.bf16 %v1282_v23 }
 0x17a   : > { %v1277_v27 = vpop.permute.xlu0 %1276 }
 0x17b   : > { %v1279_v28 = vunpack.i.h.bf16 %v1277_v27  ;;  %v1278_v29 = vunpack.i.l.bf16 %v1277_v27  ;;  %1127 = vmatprep.subr.bf16.mxu0 %v1126_v24  ;;  %1142 = vmatprep.subr.bf16.mxu1 %v1126_v24  ;;  %v1134_v32 = vpack.c.bf16 %v1284_v25, %v1283_v26 }
 0x17c   : > { %v1287_v30 = vpop.permute.xlu1 %1286  ;;  %1129 = vmatpush3.bf16.msra.mxu0 %v1126_v24  ;;  %1146 = vmatpush3.bf16.msra.mxu1 %v1126_v24 }
 0x17d   : > { %v1130_v31 = vpack.c.bf16 %v1279_v28, %v1278_v29  ;;  %v1289_v33 = vunpack.i.h.bf16 %v1287_v30  ;;  %v1288_v34 = vunpack.i.l.bf16 %v1287_v30 }
 0x17e   : > { %v567_v39 = vpop.permute.xlu0 %566 }
 0x17f   : > { %1131 = vmatprep.subr.bf16.mxu0 %v1130_v31  ;;  %1143 = vmatprep.subr.bf16.mxu1 %v1130_v31  ;;  %v1138_v35 = vpack.c.bf16 %v1289_v33, %v1288_v34 }
 0x180   : > { %1133 = vmatpush3.bf16.msra.mxu0 %v1130_v31  ;;  %1147 = vmatpush3.bf16.msra.mxu1 %v1130_v31  ;;  %v569_v38 = vpop.permute.xlu1 %568 }
 0x181   : > { %1135 = vmatprep.subr.bf16.mxu0 %v1134_v32  ;;  %1144 = vmatprep.subr.bf16.mxu1 %v1134_v32 }
 0x182   : > { %v571_v41 = vpop.permute.xlu0 %570 }
 0x184   : > { %1137 = vmatpush3.bf16.msra.mxu0 %v1134_v32  ;;  %1148 = vmatpush3.bf16.msra.mxu1 %v1134_v32  ;;  %v573_v40 = vpop.permute.xlu1 %572 }
 0x185   : > { %1139 = vmatprep.subr.bf16.mxu0 %v1138_v35  ;;  %1145 = vmatprep.subr.bf16.mxu1 %v1138_v35 }
 0x188   : > { %1141 = vmatpush3.bf16.msra.mxu0 %v1138_v35  ;;  %1149 = vmatpush3.bf16.msra.mxu1 %v1138_v35 }
 0x18b   : > { %1121 = vmatmul.mubr.msk.f32.vlgmr.msra.gmra.mrb[0].mxu0 %vm578_vm0, %v1086_v36  ;;  %1124 = vmatmul.mubr.msk.f32.vlgmr.msra.gmra.mrb[0].mxu1 %vm578_vm0, %v1090_v37 }
 0x25e   : > { %v1122_v42 = vpop.f32.mrb[0].mxu0  ;;  %v1125_v44 = vpop.f32.mrb[0].mxu1 }
 0x25f   : > { %v663_v45 = vadd.f32 %v1122_v42, %v569_v38  ;;  %v657_v46 = vpop.f32.mrb[1].mxu0  ;;  %v667_v47 = vpop.f32.mrb[1].mxu1  ;;  %v673_v48 = vadd.f32 %v1125_v44, %v573_v40 }
 0x260   : > { %v658_v50 = vadd.f32 %v657_v46, %v567_v39  ;;  %v668_v51 = vadd.f32 %v667_v47, %v571_v41 }
 0x261   : > { %v684_v52 = vmul.f32 %v1066_v43, %v663_v45  ;;  %v686_v53 = vmul.f32 %v1066_v43, %v673_v48  ;;  %v1068_v45 = vld [vmem:[#allocation11] ss:$0 sm:$0xff]  ;;  %v1069_v48 = vld [vmem:[#allocation12] ss:$0 sm:$0xff] }
 0x262   : > { %v683_v54 = vmul.f32 %v1066_v43, %v658_v50  ;;  %v685_v55 = vmul.f32 %v1066_v43, %v668_v51 }
 0x263   : > { %v2110_v58 = vadd.f32 %v1067_v49, %v684_v52  ;;  %v2112_v59 = vadd.f32 %v1067_v49, %v686_v53 }
 0x264   : > { %v2116_v62 = vadd.f32 %v1067_v49, %v683_v54  ;;  %v2118_v63 = vadd.f32 %v1067_v49, %v685_v55 }
 0x265   : > { %v699_v0 = vmax.f32 %v2110_v58, 0.0  ;;  %v701_v1 = vmax.f32 %v2112_v59, 0.0 }
 0x266   : > { %v698_v2 = vmax.f32 %v2116_v62, 0.0  ;;  %v700_v3 = vmax.f32 %v2118_v63, 0.0 }
 0x267   : > { %v703_v4 = vmul.f32 %v699_v0, %v511_v56  ;;  %v705_v5 = vmul.f32 %v701_v1, %v513_v57  ;;  %v783_v53 = vmul.f32 0.9, %v699_v0  ;;  %v795_v56 = vld [vmem:[%s2080_s11 + $0x8] sm:$0xff]  ;;  %v785_v63 = vmul.f32 0.9, %v701_v1 }
 0x268   : > { %v702_v6 = vmul.f32 %v698_v2, %v510_v60  ;;  %v704_v7 = vmul.f32 %v700_v3, %v512_v61  ;;  %v782_v55 = vmul.f32 0.9, %v698_v2  ;;  %v784_v58 = vmul.f32 0.9, %v700_v3 }
 0x269   : > { %v710_v8 = vsel %vm706_vm1, %v703_v4, 0.0  ;;  %v716_v11 = vsel %vm706_vm1, %v705_v5, 0.0 }
 0x26a   : > { %711 = vadd.xlane.f32.xlu1 %v710_v8  ;;  %v707_v9 = vsel %vm706_vm1, %v702_v6, 0.0  ;;  %v713_v10 = vsel %vm706_vm1, %v704_v7, 0.0 }
 0x26b   : > { %708 = vadd.xlane.f32.xlu0 %v707_v9  ;;  %v796_v9 = vld [vmem:[%s2080_s11 + $0x10] sm:$0xff] }
 0x26f   : > { %714 = vadd.xlane.f32.xlu0 %v713_v10 }
 0x273   : > { %717 = vadd.xlane.f32.xlu0 %v716_v11 }
 0x2f7   : > { %v712_v12 = vpop.xlane.xlu1 %711 }
 0x2f8   : > { %v721_v13 = vmul.f32 0.03125, %v712_v12  ;;  %v709_v14 = vpop.xlane.xlu0 %708 }
 0x2f9   : > { %v720_v15 = vmul.f32 0.03125, %v709_v14 }
 0x2fa   : > { %v725_v16 = vsub.f32 %v703_v4, %v721_v13  ;;  %v794_v4 = vld [vmem:[%s2080_s11] sm:$0xff]  ;;  %v797_v13 = vld [vmem:[%s2080_s11 + $0x18] sm:$0xff]  ;;  %s1532_s11 = sshll.u32 %s1666_s24, 4  ;;  %s1533_s11 = int_to_ptr.vmem [resolvable:$false] %s1532_s11 }
 0x2fb   : > { %v724_v17 = vsub.f32 %v702_v6, %v720_v15  ;;  %s1534_s19 = scalar_lea.vmem %s1533_s11, 1024  ;;  %p1535_p11 = scmp.lt.s32.totalorder %s2169_s15, %s1533_s11 }
 0x2fc   : > { %v715_v18 = vpop.xlane.xlu0 %714  ;;  %v729_v19 = vmul.f32 %v725_v16, %v725_v16  ;;  %p1536_p13 = scmp.lt.s32.totalorder %s1534_s19, %s1528_s17 }
 0x2fd   : > { %v722_v20 = vmul.f32 0.03125, %v715_v18  ;;  %v728_v21 = vmul.f32 %v724_v17, %v724_v17 }
 0x2fe   : > { %v735_v22 = vsel %vm706_vm1, %v729_v19, 0.0  ;;  %p1537_p12 = por %p1536_p13, %p1535_p11 }
 0x2ff   : > { %v726_v23 = vsub.f32 %v704_v7, %v722_v20  ;;  %736 = vadd.xlane.f32.xlu0 %v735_v22  ;;  %v732_v24 = vsel %vm706_vm1, %v728_v21, 0.0 }
 0x300   : > { %733 = vadd.xlane.f32.xlu1 %v732_v24  ;;  %v718_v25 = vpop.xlane.xlu0 %717  ;;  %p1538_p2 = pnand %p1537_p12, %p1531_p7 }
 0x301   : > { %v723_v26 = vmul.f32 0.03125, %v718_v25  ;;  %v730_v27 = vmul.f32 %v726_v23, %v726_v23 }
 0x303   : > { %v727_v28 = vsub.f32 %v705_v5, %v723_v26  ;;  %v738_v29 = vsel %vm706_vm1, %v730_v27, 0.0 }
 0x304   : > { %739 = vadd.xlane.f32.xlu1 %v738_v29 }
 0x305   : > { %v731_v30 = vmul.f32 %v727_v28, %v727_v28 }
 0x307   : > { %v741_v31 = vsel %vm706_vm1, %v731_v30, 0.0 }
 0x308   : > { %742 = vadd.xlane.f32.xlu0 %v741_v31 }
 0x38c   : > { %v737_v32 = vpop.xlane.xlu0 %736 }
 0x38d   : > { %v745_v33 = vmul.f32 0.03125, %v737_v32  ;;  %v734_v34 = vpop.xlane.xlu1 %733 }
 0x38e   : > { %v744_v35 = vmul.f32 0.03125, %v734_v34 }
 0x38f   : > { %v749_v36 = vadd.f32 1e-05, %v745_v33 }
 0x390   : > { %v748_v37 = vadd.f32 1e-05, %v744_v35 }
 0x391   : > { %1290 = vrsqrt.f32 %v749_v36  ;;  %v740_v38 = vpop.xlane.xlu1 %739 }
 0x392   : > { %1292 = vrsqrt.f32 %v748_v37  ;;  %v746_v39 = vmul.f32 0.03125, %v740_v38 }
 0x394   : > { %v750_v40 = vadd.f32 1e-05, %v746_v39 }
 0x395   : > { %v743_v41 = vpop.xlane.xlu0 %742 }
 0x396   : > { %1294 = vrsqrt.f32 %v750_v40  ;;  %v747_v42 = vmul.f32 0.03125, %v743_v41 }
 0x398   : > { %v751_v43 = vadd.f32 1e-05, %v747_v42 }
 0x39a   : > { %1296 = vrsqrt.f32 %v751_v43 }
 0x39b   : > { %v1291_v44 = vpop.eup %1290 }
 0x39c   : > { %v1293_v46 = vpop.eup %1292  ;;  %v757_v47 = vmul.f32 %v1291_v44, %v725_v16 }
 0x39d   : > { %v756_v49 = vmul.f32 %v1293_v46, %v724_v17 }
 0x39e   : > { %v768_v50 = vmul.f32 %v1068_v45, %v757_v47 }
 0x39f   : > { %v767_v51 = vmul.f32 %v1068_v45, %v756_v49 }
 0x3a0   : > { %v1295_v52 = vpop.eup %1294  ;;  %v779_v54 = vadd.f32 %v1069_v48, %v768_v50 }
 0x3a1   : > { %v778_v57 = vadd.f32 %v1069_v48, %v767_v51  ;;  %v758_v60 = vmul.f32 %v1295_v52, %v726_v23 }
 0x3a2   : > { %v787_v61 = vadd.f32 %v783_v53, %v779_v54 }
 0x3a3   : > { %v786_v5 = vadd.f32 %v782_v55, %v778_v57  ;;  %v769_v6 = vmul.f32 %v1068_v45, %v758_v60 }
 0x3a4   : > { %v1297_v7 = vpop.eup %1296  ;;  %v799_v8 = vadd.f32 %v795_v56, %v787_v61  ;;  %791 = vst.msk [vmem:[%s493_s20 + $0x8] sm:$0xff] %vm706_vm1, %v787_v61 }
 0x3a5   : > { %v798_v62 = vadd.f32 %v794_v4, %v786_v5  ;;  %v780_v0 = vadd.f32 %v1069_v48, %v769_v6  ;;  %v759_v2 = vmul.f32 %v1297_v7, %v727_v28  ;;  %790 = vst.msk [vmem:[%s493_s20] sm:$0xff] %vm706_vm1, %v786_v5 }
 0x3a6   : > { %803 = vst.msk [vmem:[%s2154_s27 + $0x8] sm:$0xff] %vm706_vm1, %v799_v8 }
 0x3a7   : > { %v788_v10 = vadd.f32 %v784_v58, %v780_v0  ;;  %v770_v11 = vmul.f32 %v1068_v45, %v759_v2  ;;  %802 = vst.msk [vmem:[%s2154_s27] sm:$0xff] %vm706_vm1, %v798_v62 }
 0x3a9   : > { %v800_v3 = vadd.f32 %v796_v9, %v788_v10  ;;  %v781_v12 = vadd.f32 %v1069_v48, %v770_v11  ;;  %792 = vst.msk [vmem:[%s493_s20 + $0x10] sm:$0xff] %vm706_vm1, %v788_v10 }
 0x3ab   : > { %v789_v14 = vadd.f32 %v785_v63, %v781_v12  ;;  %804 = vst.msk [vmem:[%s2154_s27 + $0x10] sm:$0xff] %vm706_vm1, %v800_v3 }
 0x3ad   : > { %v801_v59 = vadd.f32 %v797_v13, %v789_v14  ;;  %793 = vst.msk [vmem:[%s493_s20 + $0x18] sm:$0xff] %vm706_vm1, %v789_v14 }
 0x3ae   : > { %1541 = shalt.err (!%p1538_p2)
}
 0x3af   : > { %s1542_s29 = scalar_lea.hbm %s2166_s9, 512  ;;  %s1546_s13 = scalar_lea.hbm %s2332_s28, 1024 }
 0x3b0   : > { %p1543_p3 = scmp.ne.s32.totalorder %s2166_s9, %s1542_s29  ;;  %p1547_p4 = scmp.lt.u32.totalorder %s2166_s9, %s2332_s28 }
 0x3b1   : > { %p1548_p8 = scmp.lt.u32.totalorder %s1546_s13, %s1542_s29  ;;  %p1550_p0 = scmp.lt.u32.totalorder %s1542_s29, %s2166_s9 }
 0x3b2   : > { %p1544_p1 = pnand %p1543_p3, %p2335_p6 }
 0x3b3   : > { %p1549_p10 = por %p1548_p8, %p1547_p4 }
 0x3b4   : > { %p1545_p5 = pneg %p1544_p1 }
 0x3b5   : > { %p1551_p9 = por %p1550_p0, %p1549_p10 }
 0x3b7   : > { %p1552_p7 = pnand %p1551_p9, %p1545_p5 }
 0x3b9   : > { %1555 = shalt.err (!%p1552_p7)
}
 0x3ba   : > { %s1667_s25 = smov 128   ;;  %s1668_s30 = smov 8   ;;  %805 = vst.msk [vmem:[%s2154_s27 + $0x18] sm:$0xff] %vm706_vm1, %v801_v59 }
 0x3bb   : > { %1176 = dma.vmem_to_hbm [thread:$0]  (%p2335_p6), %s2169_s15, 512, %s2166_s9, %s807_s16, %s1667_s25, %s1667_s25, %s1668_s30  }
 0x3bc   : > { %s812_s17 = scalar_lea.sflag [#allocation17], %s2044_s23  ;;  %s1556_s24 = scalar_lea.vmem %s2180_s18, 512 }
 0x3bd   : > { %p1557_p11 = scmp.ne.s32.totalorder %s2180_s18, %s1556_s24  ;;  %s1669_s11 = smov [#allocation16]  }
 0x3be   : > { %s1560_s19 = sshll.u32 %s1669_s11, 4  ;;  %s1561_s19 = int_to_ptr.vmem [resolvable:$false] %s1560_s19 }
 0x3bf   : > { %p1558_p13 = pnand %p1557_p11, %p2335_p6  ;;  %s1562_s29 = scalar_lea.vmem %s1561_s19, 1024 }
 0x3c0   : > { %p1563_p2 = scmp.lt.s32.totalorder %s2180_s18, %s1561_s19  ;;  %p1564_p3 = scmp.lt.s32.totalorder %s1562_s29, %s1556_s24 }
 0x3c1   : > { %p1559_p12 = pneg %p1558_p13 }
 0x3c2   : > { %p1565_p1 = por %p1564_p3, %p1563_p2 }
 0x3c4   : > { %p1566_p5 = pnand %p1565_p1, %p1559_p12 }
 0x3c6   : > { %1569 = shalt.err (!%p1566_p5)
}
 0x3c7   : > { %s1570_s27 = scalar_lea.hbm %s2178_s14, 512  ;;  %s1574_s16 = scalar_lea.hbm %s2334_s26, 1024 }
 0x3c8   : > { %p1571_p4 = scmp.ne.s32.totalorder %s2178_s14, %s1570_s27  ;;  %p1575_p0 = scmp.lt.u32.totalorder %s2178_s14, %s2334_s26 }
 0x3c9   : > { %p1576_p9 = scmp.lt.u32.totalorder %s1574_s16, %s1570_s27  ;;  %p1578_p11 = scmp.lt.u32.totalorder %s1570_s27, %s2178_s14 }
 0x3ca   : > { %p1572_p8 = pnand %p1571_p4, %p2335_p6 }
 0x3cb   : > { %p1577_p7 = por %p1576_p9, %p1575_p0 }
 0x3cc   : > { %p1573_p10 = pneg %p1572_p8 }
 0x3cd   : > { %p1579_p13 = por %p1578_p11, %p1577_p7 }
 0x3cf   : > { %p1580_p12 = pnand %p1579_p13, %p1573_p10 }
 0x3d1   : > { %1583 = shalt.err (!%p1580_p12)
}
 0x3d2   : > { %1177 = dma.vmem_to_hbm [thread:$0]  (%p2335_p6), %s2180_s18, 512, %s2178_s14, %s812_s17, %s1667_s25, %s1667_s25, %s1668_s30  }
 0x3d3 PF: > { %s2336_s13 = sld [smem:[#allocation27_spill]]  ;;  %s2337_s22 = sld [smem:[#allocation32_spill]] }
 0x3d4   : > { %p2339_p3 = scmp.ge.s32.totalorder %s1650_s12, 2 }
 0x3d9   : > { %s856_s8 = sand.u32 1, %s2336_s13   ;;  %p2338_p2 = scmp.ne.s32.totalorder %s2337_s22, 0 }
 0x3da   : > { %s857_s24 = scalar_lea.sflag [#allocation4], %s856_s8 }
 0x3db   : > { %p1207_p1 = pnand %p2339_p3, %p2338_p2 }
 0x3dd   : > { %1629 = dma.done.wait (!%p1207_p1), %s857_s24, 512  }
 0x3de   : > { %1631 = vsyncadd (!%p1207_p1), %s857_s24, 4294966784  ;;  %s866_s0 = scalar_lea.sflag [#allocation17], %s856_s8 }
 0x3df   : > { %1633 = dma.done.wait (!%p1207_p1), %s866_s0, 512  }
 0x3e0   : > { %1635 = vsyncadd (!%p1207_p1), %s866_s0, 4294966784  ;;  %s2340_s12 = sld [smem:[#allocation29_spill]]  ;;  %s2341_s23 = sld [smem:[#allocation28_spill]] }
 0x3e1   : > { %s2342_s11 = sld [smem:[#allocation30_spill]]  ;;  %s2343_s30 = smov %s1642_s10 }
 0x3e6   : > { %p29_p6 = scmp.ge.s32.totalorder %s2340_s12, 4   ;;  %s2344_s10 = smov %s2341_s23 }
 0x3e8   :  { %31 = sbr.rel (!%p29_p6) target bundleno = 14 (0xe), region = 156 }
 0x3ef   :  { %871 = vsyncpa [#allocation3], 1 }
 0x3f0   :  { %873 = vsyncpa [#allocation3 + $0x1], 1 }
 0x3f1   :  { %874 = vsyncpa [#allocation6], 1 }
 0x3f2   :  { %875 = vsyncpa [#allocation10], 1 }
 0x3f3   :  { %876 = vsyncpa [#allocation13], 1 }
 0x3f4   :  { %877 = vsyncpa [#allocation4], 1 }
 0x3f5   :  { %879 = vsyncpa [#allocation4 + $0x1], 1 }
 0x3f6   :  { %880 = vsyncpa [#allocation17], 1 }
 0x3f7   :  { %882 = vsyncpa [#allocation17 + $0x1], 1 }

// kernel: polynormer_forward.29
= control target key start
LH: loop header
LB: loop body
LE: loop exit
PB: predicated region body
PF: predicated region fallthrough
CT: control target
= control target key end

     0   :  { %8 = vsyncpa [#allocation3], 0  ;;  %s1066_s0 = inlined_call_operand.hbm [shape: f32[64,32], index: 0, kind: input, shape index: {}]   ;;  %s1067_s1 = inlined_call_operand.hbm [shape: f32[32,128], index: 1, kind: input, shape index: {}]   ;;  %s1068_s2 = inlined_call_operand.hbm [shape: f32[1,128], index: 2, kind: input, shape index: {}]   ;;  %s1069_s3 = inlined_call_operand.hbm [shape: f32[64,128], index: 3, kind: output, shape index: {}]  }
   0x1   :  { %10 = vsyncpa [#allocation3 + $0x1], 0 }
   0x2   :  { %11 = vsyncpa [#allocation6], 0 }
   0x3   :  { %12 = vsyncpa [#allocation4], 0 }
   0x4   :  { %14 = vsyncpa [#allocation4 + $0x1], 0  ;;  %s817_s12 = smov 0   ;;  %s819_s13 = smov 0  }
   0x5   :  { %s821_s14 = smov 0   ;;  %s823_s15 = smov 0  }
   0x6 LB: > { %s838_s16 = sadd.s32 4294967295, %s787_s15   ;;  %s485_s17 = sadd.s32 4294967294, %s787_s15   ;;  %s787_s15 = sphi %s823_s15, %s1089_s15   ;;  %s783_s14 = sphi %s821_s14, %s1088_s14   ;;  %s779_s13 = sphi %s819_s13, %s1087_s13   ;;  %s775_s12 = sphi %s817_s12, %s1086_s12  }
   0x7   : > { %p40_p0 = scmp.ne.s32.totalorder %s779_s13, %s775_s12  ;;  %p1070_p1 = scmp.eq.s32.totalorder %s838_s16, 0 }
   0x8   : > { %p112_p3 = scmp.eq.s32.totalorder %s485_s17, 1  ;;  %p486_p5 = scmp.ge.s32.totalorder %s787_s15, 1 }
   0x9   : > { %p847_p4 = por %p1070_p1, %p40_p0  ;;  %p119_p7 = scmp.lt.s32.totalorder %s787_s15, 3 }
   0xa   : > { %p852_p6 = por %p112_p3, %p40_p0  ;;  %s789_s21 = smov [#allocation5]  }
   0xb   : > { %s1073_s18 = scalar_select %p847_p4, 1, 0 }
   0xc   : > { %s1074_s19 = scalar_select %p852_p6, 1, 0 }
   0xd   : > { %p857_p8 = pnand %p486_p5, %p119_p7  ;;  %s131_s22 = sshll.u32 %s789_s21, 4  ;;  %s861_s22 = int_to_ptr.vmem [resolvable:$true] %s131_s22 }
   0xe   : > { %s790_s24 = smov [#allocation7]   ;;  %s631_s28 = scalar_lea.hbm %s1067_s1, 512 }
   0xf   : > { %p556_p9 = pneg %p857_p8  ;;  %s145_s25 = sshll.u32 %s790_s24, 4  ;;  %s872_s25 = int_to_ptr.vmem [resolvable:$true] %s145_s25 }
  0x10   : > { %p632_p12 = scmp.ne.s32.totalorder %s1067_s1, %s631_s28  ;;  %p638_p5 = scmp.lt.u32.totalorder %s631_s28, %s1067_s1 }
  0x11   : > { %p868_p11 = pnand %p556_p9, %p1070_p1 }
  0x13   : > { %p633_p13 = pneg %p868_p11 }
  0x15   : > { %p634_p0 = pnand %p633_p13, %p632_p12 }
  0x17   : > { %p635_p3 = pneg %p634_p0 }
  0x19   : > { %p640_p7 = pnand %p638_p5, %p635_p3 }
  0x1b   : > { %643 = shalt.err (!%p640_p7)
}
  0x1c   : > { %s644_s6 = scalar_lea.vmem %s861_s22, 512  ;;  %p652_p2 = scmp.lt.s32.totalorder %s861_s22, %s861_s22 }
  0x1d   : > { %p645_p9 = scmp.ne.s32.totalorder %s861_s22, %s644_s6  ;;  %p653_p12 = scmp.lt.s32.totalorder %s644_s6, %s644_s6 }
  0x1f   : > { %p647_p10 = pnand %p645_p9, %p633_p13  ;;  %p654_p0 = por %p653_p12, %p652_p2 }
  0x21   : > { %p648_p1 = pneg %p647_p10 }
  0x23   : > { %p655_p6 = pnand %p654_p0, %p648_p1 }
  0x25   : > { %658 = shalt.err (!%p655_p6)
}
  0x26   : > { %s791_s7 = smov 128   ;;  %s792_s8 = smov 8  }
  0x27   : > { %559 = dma.hbm_to_vmem [thread:$0]  (!%p868_p11), %s1067_s1, 512, %s861_s22, [#allocation6], %s791_s7, %s791_s7, %s792_s8  }
  0x28   : > { %s659_s21 = scalar_lea.hbm %s1068_s2, 16 }
  0x29   : > { %p660_p1 = scmp.ne.s32.totalorder %s1068_s2, %s659_s21  ;;  %p666_p10 = scmp.lt.u32.totalorder %s659_s21, %s1068_s2 }
  0x2b   : > { %p662_p2 = pnand %p660_p1, %p633_p13 }
  0x2d   : > { %p663_p6 = pneg %p662_p2 }
  0x2f   : > { %p668_p3 = pnand %p666_p10, %p663_p6 }
  0x31   : > { %671 = shalt.err (!%p668_p3)
}
  0x32   : > { %s672_s22 = scalar_lea.vmem %s872_s25, 16  ;;  %s679_s29 = scalar_lea.vmem %s872_s25, 32 }
  0x33   : > { %p673_p5 = scmp.ne.s32.totalorder %s872_s25, %s672_s22  ;;  %p680_p12 = scmp.lt.s32.totalorder %s872_s25, %s872_s25 }
  0x34   : > { %p681_p0 = scmp.lt.s32.totalorder %s679_s29, %s672_s22 }
  0x35   : > { %p675_p7 = pnand %p673_p5, %p633_p13 }
  0x36   : > { %p682_p1 = por %p681_p0, %p680_p12 }
  0x37   : > { %p676_p9 = pneg %p675_p7 }
  0x39   : > { %p683_p2 = pnand %p682_p1, %p676_p9 }
  0x3b   : > { %686 = shalt.err (!%p683_p2)
}
  0x3c   : > { %562 = dma.hbm_to_vmem [thread:$0]  (!%p868_p11), %s1068_s2, 16, %s872_s25, [#allocation6]  }
  0x3d   : > { %s931_s5 = sadd.s32 1, %s787_s15   ;;  %s27_s23 = sadd.s32 1, %s783_s14 }
  0x3e   : > { %s24_s6 = ssub.s32 %s787_s15, %s931_s5  ;;  %p34_p13 = scmp.ne.s32.totalorder %s783_s14, %s779_s13 }
  0x3f   : > { %p25_p6 = scmp.eq.s32.totalorder %s24_s6, 0  ;;  %p35_p10 = scmp.eq.s32.totalorder %s787_s15, 0 }
  0x40   : > { %p1077_p3 = scmp.eq.s32.totalorder %s838_s16, 1  ;;  %p573_p7 = scmp.lt.s32.totalorder %s787_s15, 2 }
  0x41   : > { %s947_s10 = scalar_select %p25_p6, %s783_s14, %s27_s23  }
  0x42   : > { %p941_p5 = por %p1077_p3, %p34_p13  ;;  %p36_p9 = por %p35_p10, %p34_p13 }
  0x43   : > { %s156_s11 = sand.u32 1, %s783_s14   ;;  %s508_s25 = sshll.u32 %s787_s15, 9 }
  0x44   : > { %s1078_s9 = scalar_select %p941_p5, 1, 0 }
  0x45   : > { %s490_s17 = sshll.u32 %s156_s11, 5  ;;  %s954_s26 = scalar_lea.hbm %s1066_s0, %s508_s25 }
  0x46   : > { %s160_s27 = scalar_lea.vmem [#allocation2], %s490_s17  ;;  %p958_p11 = pnand %p573_p7, %p36_p9 }
  0x47   : > { %s167_s28 = sshll.u32 %s160_s27, 4  ;;  %s962_s29 = scalar_lea.sflag [#allocation3], %s156_s11  ;;  %s956_s28 = int_to_ptr.vmem [resolvable:$true] %s167_s28 }
  0x48   : > { %s687_s30 = scalar_lea.hbm %s954_s26, 512  ;;  %p689_p0 = pneg %p958_p11 }
  0x49   : > { %p688_p12 = scmp.ne.s32.totalorder %s954_s26, %s687_s30  ;;  %s692_s6 = scalar_lea.hbm %s1066_s0, 1024 }
  0x4a   : > { %p693_p13 = scmp.lt.u32.totalorder %s954_s26, %s1066_s0  ;;  %p694_p6 = scmp.lt.u32.totalorder %s692_s6, %s687_s30 }
  0x4b   : > { %p690_p1 = pnand %p689_p0, %p688_p12  ;;  %p696_p3 = scmp.lt.u32.totalorder %s687_s30, %s954_s26 }
  0x4c   : > { %p695_p10 = por %p694_p6, %p693_p13 }
  0x4d   : > { %p691_p2 = pneg %p690_p1 }
  0x4e   : > { %p697_p7 = por %p696_p3, %p695_p10 }
  0x50   : > { %p698_p9 = pnand %p697_p7, %p691_p2 }
  0x52   : > { %701 = shalt.err (!%p698_p9)
}
  0x53   : > { %s702_s11 = scalar_lea.vmem %s956_s28, 512  ;;  %s793_s21 = smov [#allocation2]  }
  0x54   : > { %p703_p12 = scmp.ne.s32.totalorder %s956_s28, %s702_s11  ;;  %s707_s24 = sshll.u32 %s793_s21, 4  ;;  %s708_s24 = int_to_ptr.vmem [resolvable:$false] %s707_s24 }
  0x55   : > { %s709_s27 = scalar_lea.vmem %s708_s24, 1024  ;;  %p710_p4 = scmp.lt.s32.totalorder %s956_s28, %s708_s24 }
  0x56   : > { %p705_p1 = pnand %p703_p12, %p689_p0  ;;  %p711_p13 = scmp.lt.s32.totalorder %s709_s27, %s702_s11 }
  0x58   : > { %p706_p5 = pneg %p705_p1  ;;  %p712_p6 = por %p711_p13, %p710_p4 }
  0x5a   : > { %p713_p10 = pnand %p712_p6, %p706_p5 }
  0x5c   : > { %716 = shalt.err (!%p713_p10)
}
  0x5d   : > { %566 = dma.hbm_to_vmem [thread:$0]  (!%p958_p11), %s954_s26, 512, %s956_s28, %s962_s29, %s791_s7, %s791_s7, %s792_s8  }
  0x5e   : > { %179 = sbr.rel (%p857_p8) target bundleno = 670 (0x29e), region = 32  ;;  %s996_s30 = sand.u32 (!%p857_p8), 1, %s779_s13  }
  0x5f   : > { %s494_s4 = sshll.u32 (!%p857_p8), %s996_s30, 5  ;;  %s182_s23 = scalar_lea.sflag (!%p857_p8), [#allocation3], %s996_s30 }
  0x60   : > { %s185_s22 = scalar_lea.vmem (!%p857_p8), [#allocation2], %s494_s4  ;;  %p1080_p4 = scmp.ne.s32.totalorder (!%p857_p8), %s1073_s18, 0 }
  0x65   : > { %762 = dma.done.wait (%p1080_p4), %s182_s23, 512  }
  0x66   : > { %764 = vsyncadd (%p1080_p4), %s182_s23, 4294966784  ;;  %p1081_p5 = scmp.eq.s32.totalorder %s838_s16, 0 }
  0x68   : > { %766 = dma.done.wait (%p1081_p5), [#allocation6], 528   ;;  %p1082_p8 = pmov %p1081_p5 }
  0x69   : > { %vm233_vm0 = vcmask 261120   ;;  %v222_v0 = vld [vmem:[#allocation5] sm:$0xff]  ;;  %v223_v1 = vld [vmem:[#allocation5 + $0x8] sm:$0xff]  ;;  %v224_v2 = vld [vmem:[#allocation5 + $0x10] sm:$0xff]  ;;  %s215_s18 = scalar_lea.vmem [#allocation8], %s494_s4  ;;  %s509_s7 = sshll.u32 %s838_s16, 9 }
  0x6a   : > { %768 = vsyncadd (%p1082_p8), [#allocation6], 4294966768  ;;  %v532_v3 = vpack.c.bf16 %v223_v1, %v222_v0  ;;  %v225_v4 = vld [vmem:[#allocation5 + $0x18] sm:$0xff]  ;;  %v218_v5 = vld [vmem:[%s185_s22] sm:$0xff]  ;;  %s393_s20 = sshll.u32 %s215_s18, 4  ;;  %s1020_s28 = scalar_lea.hbm %s1069_s3, %s509_s7  ;;  %s1022_s20 = int_to_ptr.vmem [resolvable:$true] %s393_s20 }
  0x6b   : > { %v220_v6 = vld [vmem:[%s185_s22 + $0x10] sm:$0xff]  ;;  %v536_v7 = vpack.c.bf16 %v225_v4, %v224_v2  ;;  %526 = vmatprep.mubr.msk.f32.mxu0 %vm233_vm0, %v218_v5  ;;  %v219_v8 = vld [vmem:[%s185_s22 + $0x8] sm:$0xff]  ;;  %v221_v9 = vld [vmem:[%s185_s22 + $0x18] sm:$0xff]  ;;  %s380_s29 = scalar_lea.sflag [#allocation4], %s996_s30  ;;  %s717_s6 = scalar_lea.vmem %s1022_s20, 512 }
  0x6c   : > { %529 = vmatprep.mubr.msk.f32.mxu1 %vm233_vm0, %v220_v6  ;;  %533 = vmatprep.subr.bf16.mxu0 %v532_v3  ;;  %v498_v10 = vld [vmem:[#allocation7] ss:$0 sm:$0xff]  ;;  %p718_p11 = scmp.ne.s32.totalorder %s1022_s20, %s717_s6  ;;  %p1083_p0 = scmp.ne.s32.totalorder %s1078_s9, 0 }
  0x6d   : > { %540 = vmatprep.subr.bf16.mxu1 %v532_v3  ;;  %535 = vmatpush3.bf16.msra.mxu0 %v532_v3  ;;  %s794_s16 = smov [#allocation8]  }
  0x6e   : > { %542 = vmatpush3.bf16.msra.mxu1 %v532_v3  ;;  %537 = vmatprep.subr.bf16.mxu0 %v536_v7  ;;  %p719_p2 = pnand %p718_p11, %p1083_p0  ;;  %s721_s17 = sshll.u32 %s794_s16, 4  ;;  %s722_s17 = int_to_ptr.vmem [resolvable:$false] %s721_s17 }
  0x6f   : > { %541 = vmatprep.subr.bf16.mxu1 %v536_v7  ;;  %s723_s25 = scalar_lea.vmem %s722_s17, 1024  ;;  %p724_p7 = scmp.lt.s32.totalorder %s1022_s20, %s722_s17 }
  0x70   : > { %p720_p3 = pneg %p719_p2  ;;  %p725_p9 = scmp.lt.s32.totalorder %s723_s25, %s717_s6 }
  0x71   : > { %539 = vmatpush3.bf16.msra.mxu0 %v536_v7 }
  0x72   : > { %543 = vmatpush3.bf16.msra.mxu1 %v536_v7  ;;  %p726_p12 = por %p725_p9, %p724_p7 }
  0x74   : > { %527 = vmatmul.mubr.msk.f32.vlgmr.msra.gmra.mrb[0].mxu0 %vm233_vm0, %v219_v8  ;;  %p727_p1 = pnand %p726_p12, %p720_p3 }
  0x75   : > { %530 = vmatmul.mubr.msk.f32.vlgmr.msra.gmra.mrb[0].mxu1 %vm233_vm0, %v221_v9 }
 0x147   : > { %v528_v11 = vpop.f32.mrb[0].mxu0 }
 0x148   : > { %v531_v12 = vpop.f32.mrb[0].mxu1  ;;  %v312_v13 = vpop.f32.mrb[1].mxu0  ;;  %v318_v18 = vadd.f32 %v528_v11, %v498_v10 }
 0x149   : > { %v322_v14 = vpop.f32.mrb[1].mxu1  ;;  %v313_v15 = vadd.f32 %v498_v10, %v312_v13  ;;  %v328_v17 = vadd.f32 %v531_v12, %v498_v10 }
 0x14a   : > { %v323_v16 = vadd.f32 %v498_v10, %v322_v14 }
 0x14b   : > { %331 = vmax.xlane.f32.xlu0 %v313_v15 }
 0x14c   : > { %335 = vmax.xlane.f32.xlu1 %v323_v16 }
 0x14f   : > { %333 = vmax.xlane.f32.xlu0 %v318_v18 }
 0x150   : > { %337 = vmax.xlane.f32.xlu1 %v328_v17 }
 0x1d8   : > { %v332_v20 = vpop.xlane.xlu0 %331 }
 0x1d9   : > { %v336_v19 = vpop.xlane.xlu1 %335  ;;  %v339_v22 = vsub.f32 %v313_v15, %v332_v20 }
 0x1da   : > { %v341_v21 = vsub.f32 %v323_v16, %v336_v19 }
 0x1db   : > { %v343_v23 = vmul.f32 1.442695, %v339_v22 }
 0x1dc   : > { %v334_v25 = vpop.xlane.xlu0 %333  ;;  %v347_v26 = vmul.f32 1.442695, %v341_v21 }
 0x1dd   : > { %v338_v24 = vpop.xlane.xlu1 %337  ;;  %v340_v27 = vsub.f32 %v318_v18, %v334_v25  ;;  %615 = vpow2.f32 %v343_v23 }
 0x1de   : > { %v342_v28 = vsub.f32 %v328_v17, %v338_v24  ;;  %617 = vpow2.f32 %v347_v26 }
 0x1df   : > { %v345_v29 = vmul.f32 1.442695, %v340_v27 }
 0x1e0   : > { %v349_v30 = vmul.f32 1.442695, %v342_v28 }
 0x1e1   : > { %619 = vpow2.f32 %v345_v29 }
 0x1e2   : > { %621 = vpow2.f32 %v349_v30 }
 0x1e7   : > { %v616_v31 = vpop.eup %615 }
 0x1e8   : > { %351 = vadd.xlane.f32.xlu0 %v616_v31  ;;  %v618_v32 = vpop.eup %617 }
 0x1eb   : > { %v620_v33 = vpop.eup %619 }
 0x1ec   : > { %355 = vadd.xlane.f32.xlu0 %v618_v32  ;;  %353 = vadd.xlane.f32.xlu1 %v620_v33  ;;  %v622_v34 = vpop.eup %621 }
 0x1f0   : > { %357 = vadd.xlane.f32.xlu1 %v622_v34 }
 0x275   : > { %v352_v35 = vpop.xlane.xlu0 %351 }
 0x276   : > { %623 = vlog2.f32 %v352_v35 }
 0x279   : > { %v354_v36 = vpop.xlane.xlu1 %353  ;;  %v356_v37 = vpop.xlane.xlu0 %355 }
 0x27a   : > { %625 = vlog2.f32 %v354_v36 }
 0x27b   : > { %627 = vlog2.f32 %v356_v37 }
 0x27d   : > { %v358_v38 = vpop.xlane.xlu1 %357 }
 0x27e   : > { %629 = vlog2.f32 %v358_v38 }
 0x280   : > { %v624_v39 = vpop.eup %623 }
 0x281   : > { %v360_v40 = vmul.f32 0.6931472, %v624_v39 }
 0x283   : > { %v367_v41 = vadd.f32 %v360_v40, %v332_v20 }
 0x284   : > { %v626_v42 = vpop.eup %625 }
 0x285   : > { %v628_v43 = vpop.eup %627  ;;  %v371_v44 = vsub.f32 %v313_v15, %v367_v41  ;;  %v362_v45 = vmul.f32 0.6931472, %v626_v42 }
 0x286   : > { %v364_v46 = vmul.f32 0.6931472, %v628_v43 }
 0x287   : > { %375 = vst [vmem:[%s215_s18] sm:$0xff] %v371_v44  ;;  %v368_v47 = vadd.f32 %v362_v45, %v334_v25 }
 0x288   : > { %v630_v48 = vpop.eup %629  ;;  %v369_v49 = vadd.f32 %v364_v46, %v336_v19 }
 0x289   : > { %v372_v50 = vsub.f32 %v318_v18, %v368_v47  ;;  %v366_v51 = vmul.f32 0.6931472, %v630_v48 }
 0x28a   : > { %v373_v52 = vsub.f32 %v323_v16, %v369_v49 }
 0x28b   : > { %376 = vst [vmem:[%s215_s18 + $0x8] sm:$0xff] %v372_v50  ;;  %v370_v53 = vadd.f32 %v366_v51, %v338_v24 }
 0x28c   : > { %377 = vst [vmem:[%s215_s18 + $0x10] sm:$0xff] %v373_v52 }
 0x28d   : > { %v374_v54 = vsub.f32 %v328_v17, %v370_v53 }
 0x28f   : > { %378 = vst [vmem:[%s215_s18 + $0x18] sm:$0xff] %v374_v54 }
 0x290   : > { %730 = shalt.err (!%p727_p1)
}
 0x291   : > { %s731_s11 = scalar_lea.hbm %s1020_s28, 512  ;;  %s735_s27 = scalar_lea.hbm %s1069_s3, 1024 }
 0x292   : > { %p732_p13 = scmp.ne.s32.totalorder %s1020_s28, %s731_s11  ;;  %p736_p4 = scmp.lt.u32.totalorder %s1020_s28, %s1069_s3 }
 0x293   : > { %p737_p5 = scmp.lt.u32.totalorder %s735_s27, %s731_s11  ;;  %p739_p11 = scmp.lt.u32.totalorder %s731_s11, %s1020_s28 }
 0x294   : > { %p733_p6 = pnand %p732_p13, %p1083_p0 }
 0x295   : > { %p738_p8 = por %p737_p5, %p736_p4 }
 0x296   : > { %p734_p10 = pneg %p733_p6 }
 0x297   : > { %p740_p2 = por %p739_p11, %p738_p8 }
 0x299   : > { %p741_p3 = pnand %p740_p2, %p734_p10 }
 0x29b   : > { %744 = shalt.err (!%p741_p3)
}
 0x29c   : > { %s795_s22 = smov 128   ;;  %s796_s18 = smov 8  }
 0x29d   : > { %554 = dma.vmem_to_hbm [thread:$0]  (%p1083_p0), %s1022_s20, 512, %s1020_s28, %s380_s29, %s795_s22, %s795_s22, %s796_s18  }
 0x29e PF: > { %s408_s7 = sand.u32 1, %s775_s12   ;;  %p1084_p7 = scmp.ne.s32.totalorder %s1074_s19, 0 }
 0x29f   : > { %p1085_p9 = scmp.ge.s32.totalorder %s787_s15, 2  ;;  %s409_s8 = scalar_lea.sflag [#allocation4], %s408_s7 }
 0x2a1   : > { %p568_p12 = pnand %p1085_p9, %p1084_p7 }
 0x2a3   : > { %770 = dma.done.wait (!%p568_p12), %s409_s8, 512  }
 0x2a4   : > { %772 = vsyncadd (!%p568_p12), %s409_s8, 4294966784  ;;  %p17_p1 = scmp.ge.s32.totalorder %s931_s5, 4   ;;  %s1086_s12 = smov %s779_s13 }
 0x2a5   : > { %s1087_s13 = smov %s783_s14  ;;  %s1088_s14 = smov %s947_s10 }
 0x2a6   : > { %s1089_s15 = smov %s931_s5  ;;  %19 = sbr.rel (!%p17_p1) target bundleno = 6 (0x6), region = 85 }
 0x2ad   :  { %414 = vsyncpa [#allocation3], 1 }
 0x2ae   :  { %416 = vsyncpa [#allocation3 + $0x1], 1 }
 0x2af   :  { %417 = vsyncpa [#allocation6], 1 }
 0x2b0   :  { %418 = vsyncpa [#allocation4], 1 }
 0x2b1   :  { %420 = vsyncpa [#allocation4 + $0x1], 1 }

</bundles_post_ra>
